<compile_context>
chip_gen: v7x
topology: tpu7x:2x2x1
jax: 0.10.0
libtpu: 0.0.40
codegen_flags: <defaults>
</compile_context>

<pallas_src>
import math

import jax
import jax.numpy as jnp
from jax import lax
from jax.experimental import pallas as pl
from jax.experimental.pallas import tpu as pltpu


def attention_gru_kernel(
    x_ref,            # (T, Bt, I)   time-major input tile, Bt % 8 == 0
    w_ih_cat_ref,     # (I, 3H)      pre-transposed, gate order [r | z | n] on lanes
    w_hh_cat_ref,     # (H, 3H)      pre-transposed, gate order [r | z | n] on lanes
    b_cat_ref,        # (1, 3H)      b_ih+b_hh folded for r,z ; b_ih only for n
    b_hn_ref,         # (1, H)       b_hh for the n gate (stays inside r*(...))
    w_att_ref,        # (H, A)       pre-transposed
    b_att_ref,        # (1, A)
    u_att_ref,        # (1, A)
    w_fc_ref,         # (A, O)       pre-transposed
    b_fc_ref,         # (1, O)
    out_ref,          # (Bt, O)
    gx_s,             # (T, Bt, 3H)  scratch: hoisted input projection
    h_s,              # (T, Bt, H)   scratch: per-step hidden states (for attention)
):
    T, Bt, I = x_ref.shape
    H = w_hh_cat_ref.shape[0]
    A = w_att_ref.shape[1]
    H3 = 3 * H

    # ---- hoisted input projection: one big (T*Bt, I) x (I, 3H) matmul ----
    x2d = x_ref[...].reshape(T * Bt, I)
    gx_s[...] = (
        jnp.dot(x2d, w_ih_cat_ref[...], preferred_element_type=jnp.float32)
        + b_cat_ref[...]
    ).reshape(T, Bt, H3)

    # Hoist broadcasts once (not re-emitted per unrolled iteration).
    b_hn_b = jnp.broadcast_to(b_hn_ref[...], (Bt, H))

    # ---- GRU recurrence: only the serial dependence stays inside the loop ----
    def step(t, h):
        # one fused recurrent matmul per step (3x lane fill vs 3 separate dots)
        gh = jnp.dot(h, w_hh_cat_ref[...], preferred_element_type=jnp.float32)  # (Bt, 3H)
        gx = gx_s[t]                                                             # (Bt, 3H)
        r = jax.nn.sigmoid(gx[:, 0:H] + gh[:, 0:H])
        z = jax.nn.sigmoid(gx[:, H:2 * H] + gh[:, H:2 * H])
        n = jnp.tanh(gx[:, 2 * H:H3] + r * (gh[:, 2 * H:H3] + b_hn_b))
        h_new = (1.0 - z) * n + z * h
        h_s[t] = h_new
        return h_new

    unroll_amt = True if T <= 16 else 8
    lax.fori_loop(0, T, step, jnp.zeros((Bt, H), jnp.float32), unroll=unroll_amt)

    # ---- deferred attention: one large matmul + vectorized softmax over time ----
    h_all = h_s[...].reshape(T * Bt, H)
    u = jnp.tanh(
        jnp.dot(h_all, w_att_ref[...], preferred_element_type=jnp.float32)
        + b_att_ref[...]
    )                                                     # (T*Bt, A)
    u3 = u.reshape(T, Bt, A)
    scores = jnp.sum(u3 * u_att_ref[...], axis=-1, keepdims=True)   # (T, Bt, 1)

    m = jnp.max(scores, axis=0, keepdims=True)            # (1, Bt, 1)
    e = jnp.exp(scores - m)                                # (T, Bt, 1)
    l = jnp.sum(e, axis=0, keepdims=True)                  # (1, Bt, 1)
    # EUP approx reciprocal + one Newton step (~f32 accuracy), executed once
    inv_l = pl.reciprocal(l, approx=True)
    inv_l = inv_l * (2.0 - l * inv_l)
    context = jnp.sum((e * inv_l) * u3, axis=0)            # (Bt, A)

    # ---- final linear ----
    out = jnp.dot(context, w_fc_ref[...], preferred_element_type=jnp.float32) + b_fc_ref[...]
    out_ref[...] = out.astype(out_ref.dtype)


def _pick_batch_tile(b_padded, T, H, I, O, budget_bytes=24 << 20):
    """Largest multiple-of-8 batch tile (<=256) whose per-tile VMEM footprint fits."""
    # per-row f32 bytes: gx (T,3H) + h (T,H) scratch, double-buffered x/out blocks
    per_row = 4 * (T * 4 * H + 2 * T * I + 2 * O)
    bt = max(8, min(b_padded, 256) // 8 * 8)
    while bt > 8 and bt * per_row > budget_bytes:
        bt -= 8
    return bt


def pruned_attention_gru(x, params):
    """x: (B, T, I) batch-first, float32. Returns (B, O)."""
    B, T, I = x.shape
    H = params["w_hh"].shape[1]
    O = params["w_fc"].shape[0]

    # Pruning masks are identity at forward time; params already hold the
    # effective (masked) dense weights, so no extra mask multiply is needed.

    # Pre-transpose / pre-fold all weights in XLA (free layout plumbing).
    w_ih = params["w_ih"]                    # (3H, I) rows = [r | z | n]
    w_hh = params["w_hh"]                    # (3H, H)
    b_ih = params["b_ih"].reshape(3 * H)
    b_hh = params["b_hh"].reshape(3 * H)

    w_ih_cat = w_ih.T                        # (I, 3H)
    w_hh_cat = w_hh.T                        # (H, 3H)
    # r/z gates absorb b_ih + b_hh in the hoisted projection; the n gate keeps
    # b_hh_n inside the r * (...) term (PyTorch GRU semantics).
    b_cat = jnp.concatenate(
        [b_ih[0:2 * H] + b_hh[0:2 * H], b_ih[2 * H:3 * H]]
    ).reshape(1, 3 * H)
    b_hn = b_hh[2 * H:3 * H].reshape(1, H)

    w_att = params["w_att"].T                # (H, A)
    b_att = params["b_att"]                  # (1, A)
    u_att = params["u_att"]                  # (1, A)
    w_fc = params["w_fc"].T                  # (A, O)
    b_fc = params["b_fc"]                    # (1, O)

    # Pad batch to a multiple of the chosen tile; padded rows are zeros, sliced off.
    B8 = ((B + 7) // 8) * 8
    Bt = _pick_batch_tile(B8, T, H, I, O)
    Bp = ((B8 + Bt - 1) // Bt) * Bt
    x_tm = jnp.transpose(x, (1, 0, 2))       # (T, B, I) time-major
    if Bp != B:
        x_tm = jnp.pad(x_tm, ((0, 0), (0, Bp - B), (0, 0)))

    weight_args = (w_ih_cat, w_hh_cat, b_cat, b_hn, w_att, b_att, u_att, w_fc, b_fc)
    weight_specs = [pl.BlockSpec(w.shape, lambda b: (0, 0)) for w in weight_args]

    # VMEM budget: scratch + double-buffered x/out blocks + loop-invariant weights.
    weight_bytes = 4 * sum(int(w.size) for w in weight_args)
    scratch_bytes = 4 * (T * Bt * 3 * H + T * Bt * H)
    io_bytes = 4 * (2 * T * Bt * I + 2 * Bt * O)
    vmem_limit = int(min(max(2 * (weight_bytes + scratch_bytes + io_bytes), 16 << 20),
                         64 << 20))

    grid_spec = pltpu.PrefetchScalarGridSpec(
        num_scalar_prefetch=0,
        grid=(Bp // Bt,),
        in_specs=[pl.BlockSpec((T, Bt, I), lambda b: (0, b, 0))] + weight_specs,
        out_specs=pl.BlockSpec((Bt, O), lambda b: (b, 0)),
        scratch_shapes=[
            pltpu.VMEM((T, Bt, 3 * H), jnp.float32),   # fused input projection
            pltpu.VMEM((T, Bt, H), jnp.float32),       # hidden states for attention
        ],
    )

    out = pl.pallas_call(
        attention_gru_kernel,
        out_shape=jax.ShapeDtypeStruct((Bp, O), jnp.float32),
        grid_spec=grid_spec,
        compiler_params=pltpu.CompilerParams(
            dimension_semantics=("parallel",),       # megacore-shardable batch axis
            vmem_limit_bytes=vmem_limit,
        ),
    )(x_tm, *weight_args)
    return out[:B]


def reference_forward(x, p):
    """Pure-JAX reference mirroring the PyTorch module semantics."""
    B, T, _ = x.shape
    H = p["w_hh"].shape[1]
    h = jnp.zeros((B, H), jnp.float32)
    hs = []
    for t in range(T):
        x_t = x[:, t, :]
        gx = x_t @ p["w_ih"].T + p["b_ih"]
        gh = h @ p["w_hh"].T + p["b_hh"]
        r = jax.nn.sigmoid(gx[:, 0:H] + gh[:, 0:H])
        z = jax.nn.sigmoid(gx[:, H:2 * H] + gh[:, H:2 * H])
        n = jnp.tanh(gx[:, 2 * H:3 * H] + r * gh[:, 2 * H:3 * H])
        h = (1.0 - z) * n + z * h
        hs.append(h)
    gru_out = jnp.stack(hs, axis=1)                      # (B, T, H)
    u = jnp.tanh(gru_out @ p["w_att"].T + p["b_att"])    # (B, T, A)
    scores = jnp.sum(u * p["u_att"], axis=-1)            # (B, T)
    alpha = jax.nn.softmax(scores, axis=1)
    context = jnp.sum(alpha[:, :, None] * u, axis=1)     # (B, A)
    return context @ p["w_fc"].T + p["b_fc"]


def init_params(key, input_dim, hidden_dim, attention_dim, output_dim):
    ks = jax.random.split(key, 10)
    sg = 1.0 / math.sqrt(hidden_dim)
    sa = 1.0 / math.sqrt(attention_dim)
    u = lambda k, shape, s: jax.random.uniform(k, shape, jnp.float32, -s, s)
    return {
        "w_ih": u(ks[0], (3 * hidden_dim, input_dim), sg),
        "w_hh": u(ks[1], (3 * hidden_dim, hidden_dim), sg),
        "b_ih": u(ks[2], (1, 3 * hidden_dim), sg),
        "b_hh": u(ks[3], (1, 3 * hidden_dim), sg),
        "w_att": u(ks[4], (attention_dim, hidden_dim), sa),
        "b_att": u(ks[5], (1, attention_dim), sa),
        "u_att": u(ks[6], (1, attention_dim), sa),
        "w_fc": u(ks[7], (output_dim, attention_dim), sa),
        "b_fc": u(ks[8], (1, output_dim), sa),
    }


if __name__ == "__main__":
    # small shapes consistent with the module's forward
    batch, seq = 2, 8
    input_dim, hidden_dim, attention_dim, output_dim = 4, 32, 16, 8

    key = jax.random.PRNGKey(0)
    k_x, k_p = jax.random.split(key)
    x = jax.random.normal(k_x, (batch, seq, input_dim), jnp.float32)
    params = init_params(k_p, input_dim, hidden_dim, attention_dim, output_dim)

    out = pruned_attention_gru(x, params)
    out = jax.block_until_ready(out)

    ref = reference_forward(x, params)
    assert out.shape == (batch, output_dim)
    assert jnp.allclose(out, ref, atol=2e-4, rtol=2e-4), (out, ref)

    print("KERNEL_OK")
</pallas_src>

<mosaic_0001>
module attributes {stable_mosaic.version = 11 : i64} {
  func.func @attention_gru_kernel(%arg0: i32, %arg1: memref<8x8x4xf32, #tpu.memory_space<vmem>>, %arg2: memref<4x96xf32, #tpu.memory_space<vmem>>, %arg3: memref<32x96xf32, #tpu.memory_space<vmem>>, %arg4: memref<1x96xf32, #tpu.memory_space<vmem>>, %arg5: memref<1x32xf32, #tpu.memory_space<vmem>>, %arg6: memref<32x16xf32, #tpu.memory_space<vmem>>, %arg7: memref<1x16xf32, #tpu.memory_space<vmem>>, %arg8: memref<1x16xf32, #tpu.memory_space<vmem>>, %arg9: memref<16x8xf32, #tpu.memory_space<vmem>>, %arg10: memref<1x8xf32, #tpu.memory_space<vmem>>, %arg11: memref<8x8xf32, #tpu.memory_space<vmem>>, %arg12: memref<8x8x96xf32, #tpu.memory_space<vmem>>, %arg13: memref<8x8x32xf32, #tpu.memory_space<vmem>>) attributes {dimension_semantics = [#tpu.dimension_semantics<parallel>], iteration_bounds = array<i64: 1>, scalar_prefetch = 0 : i64, scratch_operands = 2 : i64, tpu.core_type = #tpu.core_type<tc>, window_params = [{transform_indices = @transform_0, window_bounds = array<i64: 8, 8, 4>}, {pipeline_mode = #tpu.pipeline_mode<synchronous>, transform_indices = @transform_1, window_bounds = array<i64: 4, 96>}, {pipeline_mode = #tpu.pipeline_mode<synchronous>, transform_indices = @transform_2, window_bounds = array<i64: 32, 96>}, {pipeline_mode = #tpu.pipeline_mode<synchronous>, transform_indices = @transform_3, window_bounds = array<i64: 1, 96>}, {pipeline_mode = #tpu.pipeline_mode<synchronous>, transform_indices = @transform_4, window_bounds = array<i64: 1, 32>}, {pipeline_mode = #tpu.pipeline_mode<synchronous>, transform_indices = @transform_5, window_bounds = array<i64: 32, 16>}, {pipeline_mode = #tpu.pipeline_mode<synchronous>, transform_indices = @transform_6, window_bounds = array<i64: 1, 16>}, {pipeline_mode = #tpu.pipeline_mode<synchronous>, transform_indices = @transform_7, window_bounds = array<i64: 1, 16>}, {pipeline_mode = #tpu.pipeline_mode<synchronous>, transform_indices = @transform_8, window_bounds = array<i64: 16, 8>}, {pipeline_mode = #tpu.pipeline_mode<synchronous>, transform_indices = @transform_9, window_bounds = array<i64: 1, 8>}, {transform_indices = @transform_10, window_bounds = array<i64: 8, 8>}]} {
    %c0 = arith.constant 0 : index
    %c0_0 = arith.constant 0 : index
    %c0_1 = arith.constant 0 : index
    %0 = vector.load %arg1[%c0, %c0_0, %c0_1] : memref<8x8x4xf32, #tpu.memory_space<vmem>>, vector<8x8x4xf32>
    %1 = vector.shape_cast %0 : vector<8x8x4xf32> to vector<64x4xf32>
    %c0_2 = arith.constant 0 : index
    %c0_3 = arith.constant 0 : index
    %2 = vector.load %arg2[%c0_2, %c0_3] : memref<4x96xf32, #tpu.memory_space<vmem>>, vector<4x96xf32>
    %cst = arith.constant dense<0.000000e+00> : vector<64x96xf32>
    %3 = tpu.matmul %1, %2, %cst {dimension_numbers = #tpu.dot_dimension_numbers<[1], [0], [0], [1], [0, 0, 1, 1], [], []>} : vector<64x4xf32>, vector<4x96xf32>, vector<64x96xf32> -> vector<64x96xf32>
    %c0_4 = arith.constant 0 : index
    %c0_5 = arith.constant 0 : index
    %4 = vector.load %arg4[%c0_4, %c0_5] : memref<1x96xf32, #tpu.memory_space<vmem>>, vector<1x96xf32>
    %5 = vector.broadcast %4 : vector<1x96xf32> to vector<64x96xf32>
    %6 = arith.addf %3, %5 : vector<64x96xf32>
    %7 = vector.shape_cast %6 : vector<64x96xf32> to vector<8x8x96xf32>
    %c0_6 = arith.constant 0 : index
    %c0_7 = arith.constant 0 : index
    %c0_8 = arith.constant 0 : index
    %8 = vector.load %arg12[%c0_6, %c0_7, %c0_8] : memref<8x8x96xf32, #tpu.memory_space<vmem>>, vector<8x8x96xf32>
    tpu.vector_store %arg12[%c0_6, %c0_7, %c0_8], %7 {strides = array<i32>} : memref<8x8x96xf32, #tpu.memory_space<vmem>>, vector<8x8x96xf32>,
    %c0_9 = arith.constant 0 : index
    %c0_10 = arith.constant 0 : index
    %9 = vector.load %arg5[%c0_9, %c0_10] : memref<1x32xf32, #tpu.memory_space<vmem>>, vector<1x32xf32>
    %10 = vector.shape_cast %9 : vector<1x32xf32> to vector<1x32xf32>
    %11 = vector.broadcast %10 : vector<1x32xf32> to vector<8x32xf32>
    %cst_11 = arith.constant 0.000000e+00 : f32
    %12 = vector.broadcast %cst_11 : f32 to vector<8x32xf32>
    %c0_i32 = arith.constant 0 : i32
    %c0_12 = arith.constant 0 : index
    %c0_13 = arith.constant 0 : index
    %13 = vector.load %arg3[%c0_12, %c0_13] : memref<32x96xf32, #tpu.memory_space<vmem>>, vector<32x96xf32>
    %cst_14 = arith.constant dense<0.000000e+00> : vector<8x96xf32>
    %14 = tpu.matmul %12, %13, %cst_14 {dimension_numbers = #tpu.dot_dimension_numbers<[1], [0], [0], [1], [0, 0, 1, 1], [], []>} : vector<8x32xf32>, vector<32x96xf32>, vector<8x96xf32> -> vector<8x96xf32>
    %15 = arith.index_cast %c0_i32 : i32 to index
    %c0_15 = arith.constant 0 : index
    %c0_16 = arith.constant 0 : index
    %16 = vector.load %arg12[%15, %c0_15, %c0_16] : memref<8x8x96xf32, #tpu.memory_space<vmem>>, vector<1x8x96xf32>
    %17 = vector.shape_cast %16 : vector<1x8x96xf32> to vector<8x96xf32>
    %18 = vector.extract_strided_slice %17 {offsets = [0, 0], sizes = [8, 32], strides = [1, 1]} : vector<8x96xf32> to vector<8x32xf32>
    %19 = vector.extract_strided_slice %14 {offsets = [0, 0], sizes = [8, 32], strides = [1, 1]} : vector<8x96xf32> to vector<8x32xf32>
    %20 = arith.addf %18, %19 : vector<8x32xf32>
    %21 = arith.negf %20 : vector<8x32xf32>
    %22 = math.exp %21 : vector<8x32xf32>
    %cst_17 = arith.constant 1.000000e+00 : f32
    %23 = vector.broadcast %cst_17 : f32 to vector<8x32xf32>
    %24 = arith.addf %23, %22 : vector<8x32xf32>
    %25 = arith.divf %23, %24 : vector<8x32xf32>
    %26 = vector.extract_strided_slice %17 {offsets = [0, 32], sizes = [8, 32], strides = [1, 1]} : vector<8x96xf32> to vector<8x32xf32>
    %27 = vector.extract_strided_slice %14 {offsets = [0, 32], sizes = [8, 32], strides = [1, 1]} : vector<8x96xf32> to vector<8x32xf32>
    %28 = arith.addf %26, %27 : vector<8x32xf32>
    %29 = arith.negf %28 : vector<8x32xf32>
    %30 = math.exp %29 : vector<8x32xf32>
    %cst_18 = arith.constant 1.000000e+00 : f32
    %31 = vector.broadcast %cst_18 : f32 to vector<8x32xf32>
    %32 = arith.addf %31, %30 : vector<8x32xf32>
    %33 = arith.divf %31, %32 : vector<8x32xf32>
    %34 = vector.extract_strided_slice %17 {offsets = [0, 64], sizes = [8, 32], strides = [1, 1]} : vector<8x96xf32> to vector<8x32xf32>
    %35 = vector.extract_strided_slice %14 {offsets = [0, 64], sizes = [8, 32], strides = [1, 1]} : vector<8x96xf32> to vector<8x32xf32>
    %36 = arith.addf %35, %11 : vector<8x32xf32>
    %37 = arith.mulf %25, %36 : vector<8x32xf32>
    %38 = arith.addf %34, %37 : vector<8x32xf32>
    %39 = math.tanh %38 : vector<8x32xf32>
    %cst_19 = arith.constant 1.000000e+00 : f32
    %40 = vector.broadcast %cst_19 : f32 to vector<8x32xf32>
    %41 = arith.subf %40, %33 : vector<8x32xf32>
    %42 = arith.mulf %41, %39 : vector<8x32xf32>
    %43 = arith.mulf %33, %12 : vector<8x32xf32>
    %44 = arith.addf %42, %43 : vector<8x32xf32>
    %45 = arith.index_cast %c0_i32 : i32 to index
    %c0_20 = arith.constant 0 : index
    %c0_21 = arith.constant 0 : index
    %46 = vector.load %arg13[%45, %c0_20, %c0_21] : memref<8x8x32xf32, #tpu.memory_space<vmem>>, vector<1x8x32xf32>
    %47 = vector.shape_cast %46 : vector<1x8x32xf32> to vector<8x32xf32>
    %48 = vector.shape_cast %44 : vector<8x32xf32> to vector<1x8x32xf32>
    tpu.vector_store %arg13[%45, %c0_20, %c0_21], %48 {strides = array<i32>} : memref<8x8x32xf32, #tpu.memory_space<vmem>>, vector<1x8x32xf32>,
    %c1_i32 = arith.constant 1 : i32
    %c0_22 = arith.constant 0 : index
    %c0_23 = arith.constant 0 : index
    %49 = vector.load %arg3[%c0_22, %c0_23] : memref<32x96xf32, #tpu.memory_space<vmem>>, vector<32x96xf32>
    %cst_24 = arith.constant dense<0.000000e+00> : vector<8x96xf32>
    %50 = tpu.matmul %44, %49, %cst_24 {dimension_numbers = #tpu.dot_dimension_numbers<[1], [0], [0], [1], [0, 0, 1, 1], [], []>} : vector<8x32xf32>, vector<32x96xf32>, vector<8x96xf32> -> vector<8x96xf32>
    %51 = arith.index_cast %c1_i32 : i32 to index
    %c0_25 = arith.constant 0 : index
    %c0_26 = arith.constant 0 : index
    %52 = vector.load %arg12[%51, %c0_25, %c0_26] : memref<8x8x96xf32, #tpu.memory_space<vmem>>, vector<1x8x96xf32>
    %53 = vector.shape_cast %52 : vector<1x8x96xf32> to vector<8x96xf32>
    %54 = vector.extract_strided_slice %53 {offsets = [0, 0], sizes = [8, 32], strides = [1, 1]} : vector<8x96xf32> to vector<8x32xf32>
    %55 = vector.extract_strided_slice %50 {offsets = [0, 0], sizes = [8, 32], strides = [1, 1]} : vector<8x96xf32> to vector<8x32xf32>
    %56 = arith.addf %54, %55 : vector<8x32xf32>
    %57 = arith.negf %56 : vector<8x32xf32>
    %58 = math.exp %57 : vector<8x32xf32>
    %cst_27 = arith.constant 1.000000e+00 : f32
    %59 = vector.broadcast %cst_27 : f32 to vector<8x32xf32>
    %60 = arith.addf %59, %58 : vector<8x32xf32>
    %61 = arith.divf %59, %60 : vector<8x32xf32>
    %62 = vector.extract_strided_slice %53 {offsets = [0, 32], sizes = [8, 32], strides = [1, 1]} : vector<8x96xf32> to vector<8x32xf32>
    %63 = vector.extract_strided_slice %50 {offsets = [0, 32], sizes = [8, 32], strides = [1, 1]} : vector<8x96xf32> to vector<8x32xf32>
    %64 = arith.addf %62, %63 : vector<8x32xf32>
    %65 = arith.negf %64 : vector<8x32xf32>
    %66 = math.exp %65 : vector<8x32xf32>
    %cst_28 = arith.constant 1.000000e+00 : f32
    %67 = vector.broadcast %cst_28 : f32 to vector<8x32xf32>
    %68 = arith.addf %67, %66 : vector<8x32xf32>
    %69 = arith.divf %67, %68 : vector<8x32xf32>
    %70 = vector.extract_strided_slice %53 {offsets = [0, 64], sizes = [8, 32], strides = [1, 1]} : vector<8x96xf32> to vector<8x32xf32>
    %71 = vector.extract_strided_slice %50 {offsets = [0, 64], sizes = [8, 32], strides = [1, 1]} : vector<8x96xf32> to vector<8x32xf32>
    %72 = arith.addf %71, %11 : vector<8x32xf32>
    %73 = arith.mulf %61, %72 : vector<8x32xf32>
    %74 = arith.addf %70, %73 : vector<8x32xf32>
    %75 = math.tanh %74 : vector<8x32xf32>
    %cst_29 = arith.constant 1.000000e+00 : f32
    %76 = vector.broadcast %cst_29 : f32 to vector<8x32xf32>
    %77 = arith.subf %76, %69 : vector<8x32xf32>
    %78 = arith.mulf %77, %75 : vector<8x32xf32>
    %79 = arith.mulf %69, %44 : vector<8x32xf32>
    %80 = arith.addf %78, %79 : vector<8x32xf32>
    %81 = arith.index_cast %c1_i32 : i32 to index
    %c0_30 = arith.constant 0 : index
    %c0_31 = arith.constant 0 : index
    %82 = vector.load %arg13[%81, %c0_30, %c0_31] : memref<8x8x32xf32, #tpu.memory_space<vmem>>, vector<1x8x32xf32>
    %83 = vector.shape_cast %82 : vector<1x8x32xf32> to vector<8x32xf32>
    %84 = vector.shape_cast %80 : vector<8x32xf32> to vector<1x8x32xf32>
    tpu.vector_store %arg13[%81, %c0_30, %c0_31], %84 {strides = array<i32>} : memref<8x8x32xf32, #tpu.memory_space<vmem>>, vector<1x8x32xf32>,
    %c2_i32 = arith.constant 2 : i32
    %c0_32 = arith.constant 0 : index
    %c0_33 = arith.constant 0 : index
    %85 = vector.load %arg3[%c0_32, %c0_33] : memref<32x96xf32, #tpu.memory_space<vmem>>, vector<32x96xf32>
    %cst_34 = arith.constant dense<0.000000e+00> : vector<8x96xf32>
    %86 = tpu.matmul %80, %85, %cst_34 {dimension_numbers = #tpu.dot_dimension_numbers<[1], [0], [0], [1], [0, 0, 1, 1], [], []>} : vector<8x32xf32>, vector<32x96xf32>, vector<8x96xf32> -> vector<8x96xf32>
    %87 = arith.index_cast %c2_i32 : i32 to index
    %c0_35 = arith.constant 0 : index
    %c0_36 = arith.constant 0 : index
    %88 = vector.load %arg12[%87, %c0_35, %c0_36] : memref<8x8x96xf32, #tpu.memory_space<vmem>>, vector<1x8x96xf32>
    %89 = vector.shape_cast %88 : vector<1x8x96xf32> to vector<8x96xf32>
    %90 = vector.extract_strided_slice %89 {offsets = [0, 0], sizes = [8, 32], strides = [1, 1]} : vector<8x96xf32> to vector<8x32xf32>
    %91 = vector.extract_strided_slice %86 {offsets = [0, 0], sizes = [8, 32], strides = [1, 1]} : vector<8x96xf32> to vector<8x32xf32>
    %92 = arith.addf %90, %91 : vector<8x32xf32>
    %93 = arith.negf %92 : vector<8x32xf32>
    %94 = math.exp %93 : vector<8x32xf32>
    %cst_37 = arith.constant 1.000000e+00 : f32
    %95 = vector.broadcast %cst_37 : f32 to vector<8x32xf32>
    %96 = arith.addf %95, %94 : vector<8x32xf32>
    %97 = arith.divf %95, %96 : vector<8x32xf32>
    %98 = vector.extract_strided_slice %89 {offsets = [0, 32], sizes = [8, 32], strides = [1, 1]} : vector<8x96xf32> to vector<8x32xf32>
    %99 = vector.extract_strided_slice %86 {offsets = [0, 32], sizes = [8, 32], strides = [1, 1]} : vector<8x96xf32> to vector<8x32xf32>
    %100 = arith.addf %98, %99 : vector<8x32xf32>
    %101 = arith.negf %100 : vector<8x32xf32>
    %102 = math.exp %101 : vector<8x32xf32>
    %cst_38 = arith.constant 1.000000e+00 : f32
    %103 = vector.broadcast %cst_38 : f32 to vector<8x32xf32>
    %104 = arith.addf %103, %102 : vector<8x32xf32>
    %105 = arith.divf %103, %104 : vector<8x32xf32>
    %106 = vector.extract_strided_slice %89 {offsets = [0, 64], sizes = [8, 32], strides = [1, 1]} : vector<8x96xf32> to vector<8x32xf32>
    %107 = vector.extract_strided_slice %86 {offsets = [0, 64], sizes = [8, 32], strides = [1, 1]} : vector<8x96xf32> to vector<8x32xf32>
    %108 = arith.addf %107, %11 : vector<8x32xf32>
    %109 = arith.mulf %97, %108 : vector<8x32xf32>
    %110 = arith.addf %106, %109 : vector<8x32xf32>
    %111 = math.tanh %110 : vector<8x32xf32>
    %cst_39 = arith.constant 1.000000e+00 : f32
    %112 = vector.broadcast %cst_39 : f32 to vector<8x32xf32>
    %113 = arith.subf %112, %105 : vector<8x32xf32>
    %114 = arith.mulf %113, %111 : vector<8x32xf32>
    %115 = arith.mulf %105, %80 : vector<8x32xf32>
    %116 = arith.addf %114, %115 : vector<8x32xf32>
    %117 = arith.index_cast %c2_i32 : i32 to index
    %c0_40 = arith.constant 0 : index
    %c0_41 = arith.constant 0 : index
    %118 = vector.load %arg13[%117, %c0_40, %c0_41] : memref<8x8x32xf32, #tpu.memory_space<vmem>>, vector<1x8x32xf32>
    %119 = vector.shape_cast %118 : vector<1x8x32xf32> to vector<8x32xf32>
    %120 = vector.shape_cast %116 : vector<8x32xf32> to vector<1x8x32xf32>
    tpu.vector_store %arg13[%117, %c0_40, %c0_41], %120 {strides = array<i32>} : memref<8x8x32xf32, #tpu.memory_space<vmem>>, vector<1x8x32xf32>,
    %c3_i32 = arith.constant 3 : i32
    %c0_42 = arith.constant 0 : index
    %c0_43 = arith.constant 0 : index
    %121 = vector.load %arg3[%c0_42, %c0_43] : memref<32x96xf32, #tpu.memory_space<vmem>>, vector<32x96xf32>
    %cst_44 = arith.constant dense<0.000000e+00> : vector<8x96xf32>
    %122 = tpu.matmul %116, %121, %cst_44 {dimension_numbers = #tpu.dot_dimension_numbers<[1], [0], [0], [1], [0, 0, 1, 1], [], []>} : vector<8x32xf32>, vector<32x96xf32>, vector<8x96xf32> -> vector<8x96xf32>
    %123 = arith.index_cast %c3_i32 : i32 to index
    %c0_45 = arith.constant 0 : index
    %c0_46 = arith.constant 0 : index
    %124 = vector.load %arg12[%123, %c0_45, %c0_46] : memref<8x8x96xf32, #tpu.memory_space<vmem>>, vector<1x8x96xf32>
    %125 = vector.shape_cast %124 : vector<1x8x96xf32> to vector<8x96xf32>
    %126 = vector.extract_strided_slice %125 {offsets = [0, 0], sizes = [8, 32], strides = [1, 1]} : vector<8x96xf32> to vector<8x32xf32>
    %127 = vector.extract_strided_slice %122 {offsets = [0, 0], sizes = [8, 32], strides = [1, 1]} : vector<8x96xf32> to vector<8x32xf32>
    %128 = arith.addf %126, %127 : vector<8x32xf32>
    %129 = arith.negf %128 : vector<8x32xf32>
    %130 = math.exp %129 : vector<8x32xf32>
    %cst_47 = arith.constant 1.000000e+00 : f32
    %131 = vector.broadcast %cst_47 : f32 to vector<8x32xf32>
    %132 = arith.addf %131, %130 : vector<8x32xf32>
    %133 = arith.divf %131, %132 : vector<8x32xf32>
    %134 = vector.extract_strided_slice %125 {offsets = [0, 32], sizes = [8, 32], strides = [1, 1]} : vector<8x96xf32> to vector<8x32xf32>
    %135 = vector.extract_strided_slice %122 {offsets = [0, 32], sizes = [8, 32], strides = [1, 1]} : vector<8x96xf32> to vector<8x32xf32>
    %136 = arith.addf %134, %135 : vector<8x32xf32>
    %137 = arith.negf %136 : vector<8x32xf32>
    %138 = math.exp %137 : vector<8x32xf32>
    %cst_48 = arith.constant 1.000000e+00 : f32
    %139 = vector.broadcast %cst_48 : f32 to vector<8x32xf32>
    %140 = arith.addf %139, %138 : vector<8x32xf32>
    %141 = arith.divf %139, %140 : vector<8x32xf32>
    %142 = vector.extract_strided_slice %125 {offsets = [0, 64], sizes = [8, 32], strides = [1, 1]} : vector<8x96xf32> to vector<8x32xf32>
    %143 = vector.extract_strided_slice %122 {offsets = [0, 64], sizes = [8, 32], strides = [1, 1]} : vector<8x96xf32> to vector<8x32xf32>
    %144 = arith.addf %143, %11 : vector<8x32xf32>
    %145 = arith.mulf %133, %144 : vector<8x32xf32>
    %146 = arith.addf %142, %145 : vector<8x32xf32>
    %147 = math.tanh %146 : vector<8x32xf32>
    %cst_49 = arith.constant 1.000000e+00 : f32
    %148 = vector.broadcast %cst_49 : f32 to vector<8x32xf32>
    %149 = arith.subf %148, %141 : vector<8x32xf32>
    %150 = arith.mulf %149, %147 : vector<8x32xf32>
    %151 = arith.mulf %141, %116 : vector<8x32xf32>
    %152 = arith.addf %150, %151 : vector<8x32xf32>
    %153 = arith.index_cast %c3_i32 : i32 to index
    %c0_50 = arith.constant 0 : index
    %c0_51 = arith.constant 0 : index
    %154 = vector.load %arg13[%153, %c0_50, %c0_51] : memref<8x8x32xf32, #tpu.memory_space<vmem>>, vector<1x8x32xf32>
    %155 = vector.shape_cast %154 : vector<1x8x32xf32> to vector<8x32xf32>
    %156 = vector.shape_cast %152 : vector<8x32xf32> to vector<1x8x32xf32>
    tpu.vector_store %arg13[%153, %c0_50, %c0_51], %156 {strides = array<i32>} : memref<8x8x32xf32, #tpu.memory_space<vmem>>, vector<1x8x32xf32>,
    %c4_i32 = arith.constant 4 : i32
    %c0_52 = arith.constant 0 : index
    %c0_53 = arith.constant 0 : index
    %157 = vector.load %arg3[%c0_52, %c0_53] : memref<32x96xf32, #tpu.memory_space<vmem>>, vector<32x96xf32>
    %cst_54 = arith.constant dense<0.000000e+00> : vector<8x96xf32>
    %158 = tpu.matmul %152, %157, %cst_54 {dimension_numbers = #tpu.dot_dimension_numbers<[1], [0], [0], [1], [0, 0, 1, 1], [], []>} : vector<8x32xf32>, vector<32x96xf32>, vector<8x96xf32> -> vector<8x96xf32>
    %159 = arith.index_cast %c4_i32 : i32 to index
    %c0_55 = arith.constant 0 : index
    %c0_56 = arith.constant 0 : index
    %160 = vector.load %arg12[%159, %c0_55, %c0_56] : memref<8x8x96xf32, #tpu.memory_space<vmem>>, vector<1x8x96xf32>
    %161 = vector.shape_cast %160 : vector<1x8x96xf32> to vector<8x96xf32>
    %162 = vector.extract_strided_slice %161 {offsets = [0, 0], sizes = [8, 32], strides = [1, 1]} : vector<8x96xf32> to vector<8x32xf32>
    %163 = vector.extract_strided_slice %158 {offsets = [0, 0], sizes = [8, 32], strides = [1, 1]} : vector<8x96xf32> to vector<8x32xf32>
    %164 = arith.addf %162, %163 : vector<8x32xf32>
    %165 = arith.negf %164 : vector<8x32xf32>
    %166 = math.exp %165 : vector<8x32xf32>
    %cst_57 = arith.constant 1.000000e+00 : f32
    %167 = vector.broadcast %cst_57 : f32 to vector<8x32xf32>
    %168 = arith.addf %167, %166 : vector<8x32xf32>
    %169 = arith.divf %167, %168 : vector<8x32xf32>
    %170 = vector.extract_strided_slice %161 {offsets = [0, 32], sizes = [8, 32], strides = [1, 1]} : vector<8x96xf32> to vector<8x32xf32>
    %171 = vector.extract_strided_slice %158 {offsets = [0, 32], sizes = [8, 32], strides = [1, 1]} : vector<8x96xf32> to vector<8x32xf32>
    %172 = arith.addf %170, %171 : vector<8x32xf32>
    %173 = arith.negf %172 : vector<8x32xf32>
    %174 = math.exp %173 : vector<8x32xf32>
    %cst_58 = arith.constant 1.000000e+00 : f32
    %175 = vector.broadcast %cst_58 : f32 to vector<8x32xf32>
    %176 = arith.addf %175, %174 : vector<8x32xf32>
    %177 = arith.divf %175, %176 : vector<8x32xf32>
    %178 = vector.extract_strided_slice %161 {offsets = [0, 64], sizes = [8, 32], strides = [1, 1]} : vector<8x96xf32> to vector<8x32xf32>
    %179 = vector.extract_strided_slice %158 {offsets = [0, 64], sizes = [8, 32], strides = [1, 1]} : vector<8x96xf32> to vector<8x32xf32>
    %180 = arith.addf %179, %11 : vector<8x32xf32>
    %181 = arith.mulf %169, %180 : vector<8x32xf32>
    %182 = arith.addf %178, %181 : vector<8x32xf32>
    %183 = math.tanh %182 : vector<8x32xf32>
    %cst_59 = arith.constant 1.000000e+00 : f32
    %184 = vector.broadcast %cst_59 : f32 to vector<8x32xf32>
    %185 = arith.subf %184, %177 : vector<8x32xf32>
    %186 = arith.mulf %185, %183 : vector<8x32xf32>
    %187 = arith.mulf %177, %152 : vector<8x32xf32>
    %188 = arith.addf %186, %187 : vector<8x32xf32>
    %189 = arith.index_cast %c4_i32 : i32 to index
    %c0_60 = arith.constant 0 : index
    %c0_61 = arith.constant 0 : index
    %190 = vector.load %arg13[%189, %c0_60, %c0_61] : memref<8x8x32xf32, #tpu.memory_space<vmem>>, vector<1x8x32xf32>
    %191 = vector.shape_cast %190 : vector<1x8x32xf32> to vector<8x32xf32>
    %192 = vector.shape_cast %188 : vector<8x32xf32> to vector<1x8x32xf32>
    tpu.vector_store %arg13[%189, %c0_60, %c0_61], %192 {strides = array<i32>} : memref<8x8x32xf32, #tpu.memory_space<vmem>>, vector<1x8x32xf32>,
    %c5_i32 = arith.constant 5 : i32
    %c0_62 = arith.constant 0 : index
    %c0_63 = arith.constant 0 : index
    %193 = vector.load %arg3[%c0_62, %c0_63] : memref<32x96xf32, #tpu.memory_space<vmem>>, vector<32x96xf32>
    %cst_64 = arith.constant dense<0.000000e+00> : vector<8x96xf32>
    %194 = tpu.matmul %188, %193, %cst_64 {dimension_numbers = #tpu.dot_dimension_numbers<[1], [0], [0], [1], [0, 0, 1, 1], [], []>} : vector<8x32xf32>, vector<32x96xf32>, vector<8x96xf32> -> vector<8x96xf32>
    %195 = arith.index_cast %c5_i32 : i32 to index
    %c0_65 = arith.constant 0 : index
    %c0_66 = arith.constant 0 : index
    %196 = vector.load %arg12[%195, %c0_65, %c0_66] : memref<8x8x96xf32, #tpu.memory_space<vmem>>, vector<1x8x96xf32>
    %197 = vector.shape_cast %196 : vector<1x8x96xf32> to vector<8x96xf32>
    %198 = vector.extract_strided_slice %197 {offsets = [0, 0], sizes = [8, 32], strides = [1, 1]} : vector<8x96xf32> to vector<8x32xf32>
    %199 = vector.extract_strided_slice %194 {offsets = [0, 0], sizes = [8, 32], strides = [1, 1]} : vector<8x96xf32> to vector<8x32xf32>
    %200 = arith.addf %198, %199 : vector<8x32xf32>
    %201 = arith.negf %200 : vector<8x32xf32>
    %202 = math.exp %201 : vector<8x32xf32>
    %cst_67 = arith.constant 1.000000e+00 : f32
    %203 = vector.broadcast %cst_67 : f32 to vector<8x32xf32>
    %204 = arith.addf %203, %202 : vector<8x32xf32>
    %205 = arith.divf %203, %204 : vector<8x32xf32>
    %206 = vector.extract_strided_slice %197 {offsets = [0, 32], sizes = [8, 32], strides = [1, 1]} : vector<8x96xf32> to vector<8x32xf32>
    %207 = vector.extract_strided_slice %194 {offsets = [0, 32], sizes = [8, 32], strides = [1, 1]} : vector<8x96xf32> to vector<8x32xf32>
    %208 = arith.addf %206, %207 : vector<8x32xf32>
    %209 = arith.negf %208 : vector<8x32xf32>
    %210 = math.exp %209 : vector<8x32xf32>
    %cst_68 = arith.constant 1.000000e+00 : f32
    %211 = vector.broadcast %cst_68 : f32 to vector<8x32xf32>
    %212 = arith.addf %211, %210 : vector<8x32xf32>
    %213 = arith.divf %211, %212 : vector<8x32xf32>
    %214 = vector.extract_strided_slice %197 {offsets = [0, 64], sizes = [8, 32], strides = [1, 1]} : vector<8x96xf32> to vector<8x32xf32>
    %215 = vector.extract_strided_slice %194 {offsets = [0, 64], sizes = [8, 32], strides = [1, 1]} : vector<8x96xf32> to vector<8x32xf32>
    %216 = arith.addf %215, %11 : vector<8x32xf32>
    %217 = arith.mulf %205, %216 : vector<8x32xf32>
    %218 = arith.addf %214, %217 : vector<8x32xf32>
    %219 = math.tanh %218 : vector<8x32xf32>
    %cst_69 = arith.constant 1.000000e+00 : f32
    %220 = vector.broadcast %cst_69 : f32 to vector<8x32xf32>
    %221 = arith.subf %220, %213 : vector<8x32xf32>
    %222 = arith.mulf %221, %219 : vector<8x32xf32>
    %223 = arith.mulf %213, %188 : vector<8x32xf32>
    %224 = arith.addf %222, %223 : vector<8x32xf32>
    %225 = arith.index_cast %c5_i32 : i32 to index
    %c0_70 = arith.constant 0 : index
    %c0_71 = arith.constant 0 : index
    %226 = vector.load %arg13[%225, %c0_70, %c0_71] : memref<8x8x32xf32, #tpu.memory_space<vmem>>, vector<1x8x32xf32>
    %227 = vector.shape_cast %226 : vector<1x8x32xf32> to vector<8x32xf32>
    %228 = vector.shape_cast %224 : vector<8x32xf32> to vector<1x8x32xf32>
    tpu.vector_store %arg13[%225, %c0_70, %c0_71], %228 {strides = array<i32>} : memref<8x8x32xf32, #tpu.memory_space<vmem>>, vector<1x8x32xf32>,
    %c6_i32 = arith.constant 6 : i32
    %c0_72 = arith.constant 0 : index
    %c0_73 = arith.constant 0 : index
    %229 = vector.load %arg3[%c0_72, %c0_73] : memref<32x96xf32, #tpu.memory_space<vmem>>, vector<32x96xf32>
    %cst_74 = arith.constant dense<0.000000e+00> : vector<8x96xf32>
    %230 = tpu.matmul %224, %229, %cst_74 {dimension_numbers = #tpu.dot_dimension_numbers<[1], [0], [0], [1], [0, 0, 1, 1], [], []>} : vector<8x32xf32>, vector<32x96xf32>, vector<8x96xf32> -> vector<8x96xf32>
    %231 = arith.index_cast %c6_i32 : i32 to index
    %c0_75 = arith.constant 0 : index
    %c0_76 = arith.constant 0 : index
    %232 = vector.load %arg12[%231, %c0_75, %c0_76] : memref<8x8x96xf32, #tpu.memory_space<vmem>>, vector<1x8x96xf32>
    %233 = vector.shape_cast %232 : vector<1x8x96xf32> to vector<8x96xf32>
    %234 = vector.extract_strided_slice %233 {offsets = [0, 0], sizes = [8, 32], strides = [1, 1]} : vector<8x96xf32> to vector<8x32xf32>
    %235 = vector.extract_strided_slice %230 {offsets = [0, 0], sizes = [8, 32], strides = [1, 1]} : vector<8x96xf32> to vector<8x32xf32>
    %236 = arith.addf %234, %235 : vector<8x32xf32>
    %237 = arith.negf %236 : vector<8x32xf32>
    %238 = math.exp %237 : vector<8x32xf32>
    %cst_77 = arith.constant 1.000000e+00 : f32
    %239 = vector.broadcast %cst_77 : f32 to vector<8x32xf32>
    %240 = arith.addf %239, %238 : vector<8x32xf32>
    %241 = arith.divf %239, %240 : vector<8x32xf32>
    %242 = vector.extract_strided_slice %233 {offsets = [0, 32], sizes = [8, 32], strides = [1, 1]} : vector<8x96xf32> to vector<8x32xf32>
    %243 = vector.extract_strided_slice %230 {offsets = [0, 32], sizes = [8, 32], strides = [1, 1]} : vector<8x96xf32> to vector<8x32xf32>
    %244 = arith.addf %242, %243 : vector<8x32xf32>
    %245 = arith.negf %244 : vector<8x32xf32>
    %246 = math.exp %245 : vector<8x32xf32>
    %cst_78 = arith.constant 1.000000e+00 : f32
    %247 = vector.broadcast %cst_78 : f32 to vector<8x32xf32>
    %248 = arith.addf %247, %246 : vector<8x32xf32>
    %249 = arith.divf %247, %248 : vector<8x32xf32>
    %250 = vector.extract_strided_slice %233 {offsets = [0, 64], sizes = [8, 32], strides = [1, 1]} : vector<8x96xf32> to vector<8x32xf32>
    %251 = vector.extract_strided_slice %230 {offsets = [0, 64], sizes = [8, 32], strides = [1, 1]} : vector<8x96xf32> to vector<8x32xf32>
    %252 = arith.addf %251, %11 : vector<8x32xf32>
    %253 = arith.mulf %241, %252 : vector<8x32xf32>
    %254 = arith.addf %250, %253 : vector<8x32xf32>
    %255 = math.tanh %254 : vector<8x32xf32>
    %cst_79 = arith.constant 1.000000e+00 : f32
    %256 = vector.broadcast %cst_79 : f32 to vector<8x32xf32>
    %257 = arith.subf %256, %249 : vector<8x32xf32>
    %258 = arith.mulf %257, %255 : vector<8x32xf32>
    %259 = arith.mulf %249, %224 : vector<8x32xf32>
    %260 = arith.addf %258, %259 : vector<8x32xf32>
    %261 = arith.index_cast %c6_i32 : i32 to index
    %c0_80 = arith.constant 0 : index
    %c0_81 = arith.constant 0 : index
    %262 = vector.load %arg13[%261, %c0_80, %c0_81] : memref<8x8x32xf32, #tpu.memory_space<vmem>>, vector<1x8x32xf32>
    %263 = vector.shape_cast %262 : vector<1x8x32xf32> to vector<8x32xf32>
    %264 = vector.shape_cast %260 : vector<8x32xf32> to vector<1x8x32xf32>
    tpu.vector_store %arg13[%261, %c0_80, %c0_81], %264 {strides = array<i32>} : memref<8x8x32xf32, #tpu.memory_space<vmem>>, vector<1x8x32xf32>,
    %c7_i32 = arith.constant 7 : i32
    %c0_82 = arith.constant 0 : index
    %c0_83 = arith.constant 0 : index
    %265 = vector.load %arg3[%c0_82, %c0_83] : memref<32x96xf32, #tpu.memory_space<vmem>>, vector<32x96xf32>
    %cst_84 = arith.constant dense<0.000000e+00> : vector<8x96xf32>
    %266 = tpu.matmul %260, %265, %cst_84 {dimension_numbers = #tpu.dot_dimension_numbers<[1], [0], [0], [1], [0, 0, 1, 1], [], []>} : vector<8x32xf32>, vector<32x96xf32>, vector<8x96xf32> -> vector<8x96xf32>
    %267 = arith.index_cast %c7_i32 : i32 to index
    %c0_85 = arith.constant 0 : index
    %c0_86 = arith.constant 0 : index
    %268 = vector.load %arg12[%267, %c0_85, %c0_86] : memref<8x8x96xf32, #tpu.memory_space<vmem>>, vector<1x8x96xf32>
    %269 = vector.shape_cast %268 : vector<1x8x96xf32> to vector<8x96xf32>
    %270 = vector.extract_strided_slice %269 {offsets = [0, 0], sizes = [8, 32], strides = [1, 1]} : vector<8x96xf32> to vector<8x32xf32>
    %271 = vector.extract_strided_slice %266 {offsets = [0, 0], sizes = [8, 32], strides = [1, 1]} : vector<8x96xf32> to vector<8x32xf32>
    %272 = arith.addf %270, %271 : vector<8x32xf32>
    %273 = arith.negf %272 : vector<8x32xf32>
    %274 = math.exp %273 : vector<8x32xf32>
    %cst_87 = arith.constant 1.000000e+00 : f32
    %275 = vector.broadcast %cst_87 : f32 to vector<8x32xf32>
    %276 = arith.addf %275, %274 : vector<8x32xf32>
    %277 = arith.divf %275, %276 : vector<8x32xf32>
    %278 = vector.extract_strided_slice %269 {offsets = [0, 32], sizes = [8, 32], strides = [1, 1]} : vector<8x96xf32> to vector<8x32xf32>
    %279 = vector.extract_strided_slice %266 {offsets = [0, 32], sizes = [8, 32], strides = [1, 1]} : vector<8x96xf32> to vector<8x32xf32>
    %280 = arith.addf %278, %279 : vector<8x32xf32>
    %281 = arith.negf %280 : vector<8x32xf32>
    %282 = math.exp %281 : vector<8x32xf32>
    %cst_88 = arith.constant 1.000000e+00 : f32
    %283 = vector.broadcast %cst_88 : f32 to vector<8x32xf32>
    %284 = arith.addf %283, %282 : vector<8x32xf32>
    %285 = arith.divf %283, %284 : vector<8x32xf32>
    %286 = vector.extract_strided_slice %269 {offsets = [0, 64], sizes = [8, 32], strides = [1, 1]} : vector<8x96xf32> to vector<8x32xf32>
    %287 = vector.extract_strided_slice %266 {offsets = [0, 64], sizes = [8, 32], strides = [1, 1]} : vector<8x96xf32> to vector<8x32xf32>
    %288 = arith.addf %287, %11 : vector<8x32xf32>
    %289 = arith.mulf %277, %288 : vector<8x32xf32>
    %290 = arith.addf %286, %289 : vector<8x32xf32>
    %291 = math.tanh %290 : vector<8x32xf32>
    %cst_89 = arith.constant 1.000000e+00 : f32
    %292 = vector.broadcast %cst_89 : f32 to vector<8x32xf32>
    %293 = arith.subf %292, %285 : vector<8x32xf32>
    %294 = arith.mulf %293, %291 : vector<8x32xf32>
    %295 = arith.mulf %285, %260 : vector<8x32xf32>
    %296 = arith.addf %294, %295 : vector<8x32xf32>
    %297 = arith.index_cast %c7_i32 : i32 to index
    %c0_90 = arith.constant 0 : index
    %c0_91 = arith.constant 0 : index
    %298 = vector.load %arg13[%297, %c0_90, %c0_91] : memref<8x8x32xf32, #tpu.memory_space<vmem>>, vector<1x8x32xf32>
    %299 = vector.shape_cast %298 : vector<1x8x32xf32> to vector<8x32xf32>
    %300 = vector.shape_cast %296 : vector<8x32xf32> to vector<1x8x32xf32>
    tpu.vector_store %arg13[%297, %c0_90, %c0_91], %300 {strides = array<i32>} : memref<8x8x32xf32, #tpu.memory_space<vmem>>, vector<1x8x32xf32>,
    %c8_i32 = arith.constant 8 : i32
    %c0_92 = arith.constant 0 : index
    %c0_93 = arith.constant 0 : index
    %c0_94 = arith.constant 0 : index
    %301 = vector.load %arg13[%c0_92, %c0_93, %c0_94] : memref<8x8x32xf32, #tpu.memory_space<vmem>>, vector<8x8x32xf32>
    %302 = vector.shape_cast %301 : vector<8x8x32xf32> to vector<64x32xf32>
    %c0_95 = arith.constant 0 : index
    %c0_96 = arith.constant 0 : index
    %303 = vector.load %arg6[%c0_95, %c0_96] : memref<32x16xf32, #tpu.memory_space<vmem>>, vector<32x16xf32>
    %cst_97 = arith.constant dense<0.000000e+00> : vector<64x16xf32>
    %304 = tpu.matmul %302, %303, %cst_97 {dimension_numbers = #tpu.dot_dimension_numbers<[1], [0], [0], [1], [0, 0, 1, 1], [], []>} : vector<64x32xf32>, vector<32x16xf32>, vector<64x16xf32> -> vector<64x16xf32>
    %c0_98 = arith.constant 0 : index
    %c0_99 = arith.constant 0 : index
    %305 = vector.load %arg7[%c0_98, %c0_99] : memref<1x16xf32, #tpu.memory_space<vmem>>, vector<1x16xf32>
    %306 = vector.broadcast %305 : vector<1x16xf32> to vector<64x16xf32>
    %307 = arith.addf %304, %306 : vector<64x16xf32>
    %308 = math.tanh %307 : vector<64x16xf32>
    %309 = vector.shape_cast %308 : vector<64x16xf32> to vector<8x8x16xf32>
    %c0_100 = arith.constant 0 : index
    %c0_101 = arith.constant 0 : index
    %310 = vector.load %arg8[%c0_100, %c0_101] : memref<1x16xf32, #tpu.memory_space<vmem>>, vector<1x16xf32>
    %311 = vector.shape_cast %310 : vector<1x16xf32> to vector<1x1x16xf32>
    %312 = vector.broadcast %311 : vector<1x1x16xf32> to vector<8x8x16xf32>
    %313 = arith.mulf %309, %312 : vector<8x8x16xf32>
    %cst_102 = arith.constant dense<0.000000e+00> : vector<8x8xf32>
    %314 = vector.multi_reduction <add>, %313, %cst_102 [2] : vector<8x8x16xf32> to vector<8x8xf32>
    %315 = vector.shape_cast %314 : vector<8x8xf32> to vector<8x8x1xf32>
    %cst_103 = arith.constant dense<0xFF800000> : vector<8x1xf32>
    %316 = vector.multi_reduction <maximumf>, %315, %cst_103 [0] : vector<8x8x1xf32> to vector<8x1xf32>
    %317 = vector.shape_cast %316 : vector<8x1xf32> to vector<1x8x1xf32>
    %318 = vector.broadcast %317 : vector<1x8x1xf32> to vector<8x8x1xf32>
    %319 = arith.subf %315, %318 : vector<8x8x1xf32>
    %320 = math.exp %319 : vector<8x8x1xf32>
    %cst_104 = arith.constant dense<0.000000e+00> : vector<8x1xf32>
    %321 = vector.multi_reduction <add>, %320, %cst_104 [0] : vector<8x8x1xf32> to vector<8x1xf32>
    %322 = vector.shape_cast %321 : vector<8x1xf32> to vector<1x8x1xf32>
    %323 = tpu.reciprocal %322 {approx = true} : vector<1x8x1xf32> -> vector<1x8x1xf32>
    %324 = arith.mulf %322, %323 : vector<1x8x1xf32>
    %cst_105 = arith.constant 2.000000e+00 : f32
    %325 = vector.broadcast %cst_105 : f32 to vector<1x8x1xf32>
    %326 = arith.subf %325, %324 : vector<1x8x1xf32>
    %327 = arith.mulf %323, %326 : vector<1x8x1xf32>
    %328 = vector.broadcast %327 : vector<1x8x1xf32> to vector<8x8x1xf32>
    %329 = arith.mulf %320, %328 : vector<8x8x1xf32>
    %330 = vector.broadcast %329 : vector<8x8x1xf32> to vector<8x8x16xf32>
    %331 = arith.mulf %330, %309 : vector<8x8x16xf32>
    %cst_106 = arith.constant dense<0.000000e+00> : vector<8x16xf32>
    %332 = vector.multi_reduction <add>, %331, %cst_106 [0] : vector<8x8x16xf32> to vector<8x16xf32>
    %c0_107 = arith.constant 0 : index
    %c0_108 = arith.constant 0 : index
    %333 = vector.load %arg9[%c0_107, %c0_108] : memref<16x8xf32, #tpu.memory_space<vmem>>, vector<16x8xf32>
    %cst_109 = arith.constant dense<0.000000e+00> : vector<8x8xf32>
    %334 = tpu.matmul %332, %333, %cst_109 {dimension_numbers = #tpu.dot_dimension_numbers<[1], [0], [0], [1], [0, 0, 1, 1], [], []>} : vector<8x16xf32>, vector<16x8xf32>, vector<8x8xf32> -> vector<8x8xf32>
    %c0_110 = arith.constant 0 : index
    %c0_111 = arith.constant 0 : index
    %335 = vector.load %arg10[%c0_110, %c0_111] : memref<1x8xf32, #tpu.memory_space<vmem>>, vector<1x8xf32>
    %336 = vector.broadcast %335 : vector<1x8xf32> to vector<8x8xf32>
    %337 = arith.addf %334, %336 : vector<8x8xf32>
    %c0_112 = arith.constant 0 : index
    %c0_113 = arith.constant 0 : index
    %338 = vector.load %arg11[%c0_112, %c0_113] : memref<8x8xf32, #tpu.memory_space<vmem>>, vector<8x8xf32>
    tpu.vector_store %arg11[%c0_112, %c0_113], %337 {strides = array<i32>} : memref<8x8xf32, #tpu.memory_space<vmem>>, vector<8x8xf32>,
    return
  }
  func.func @transform_0(%arg0: i32) -> (i32, i32, i32) {
    %c0_i32 = arith.constant 0 : i32
    %c0_i32_0 = arith.constant 0 : i32
    %c0_i32_1 = arith.constant 0 : i32
    return %c0_i32, %arg0, %c0_i32_0 : i32, i32, i32
  }
  func.func @transform_1(%arg0: i32) -> (i32, i32) {
    %c0_i32 = arith.constant 0 : i32
    %c0_i32_0 = arith.constant 0 : i32
    %c0_i32_1 = arith.constant 0 : i32
    return %c0_i32, %c0_i32_0 : i32, i32
  }
  func.func @transform_2(%arg0: i32) -> (i32, i32) {
    %c0_i32 = arith.constant 0 : i32
    %c0_i32_0 = arith.constant 0 : i32
    %c0_i32_1 = arith.constant 0 : i32
    return %c0_i32, %c0_i32_0 : i32, i32
  }
  func.func @transform_3(%arg0: i32) -> (i32, i32) {
    %c0_i32 = arith.constant 0 : i32
    %c0_i32_0 = arith.constant 0 : i32
    %c0_i32_1 = arith.constant 0 : i32
    return %c0_i32, %c0_i32_0 : i32, i32
  }
  func.func @transform_4(%arg0: i32) -> (i32, i32) {
    %c0_i32 = arith.constant 0 : i32
    %c0_i32_0 = arith.constant 0 : i32
    %c0_i32_1 = arith.constant 0 : i32
    return %c0_i32, %c0_i32_0 : i32, i32
  }
  func.func @transform_5(%arg0: i32) -> (i32, i32) {
    %c0_i32 = arith.constant 0 : i32
    %c0_i32_0 = arith.constant 0 : i32
    %c0_i32_1 = arith.constant 0 : i32
    return %c0_i32, %c0_i32_0 : i32, i32
  }
  func.func @transform_6(%arg0: i32) -> (i32, i32) {
    %c0_i32 = arith.constant 0 : i32
    %c0_i32_0 = arith.constant 0 : i32
    %c0_i32_1 = arith.constant 0 : i32
    return %c0_i32, %c0_i32_0 : i32, i32
  }
  func.func @transform_7(%arg0: i32) -> (i32, i32) {
    %c0_i32 = arith.constant 0 : i32
    %c0_i32_0 = arith.constant 0 : i32
    %c0_i32_1 = arith.constant 0 : i32
    return %c0_i32, %c0_i32_0 : i32, i32
  }
  func.func @transform_8(%arg0: i32) -> (i32, i32) {
    %c0_i32 = arith.constant 0 : i32
    %c0_i32_0 = arith.constant 0 : i32
    %c0_i32_1 = arith.constant 0 : i32
    return %c0_i32, %c0_i32_0 : i32, i32
  }
  func.func @transform_9(%arg0: i32) -> (i32, i32) {
    %c0_i32 = arith.constant 0 : i32
    %c0_i32_0 = arith.constant 0 : i32
    %c0_i32_1 = arith.constant 0 : i32
    return %c0_i32, %c0_i32_0 : i32, i32
  }
  func.func @transform_10(%arg0: i32) -> (i32, i32) {
    %c0_i32 = arith.constant 0 : i32
    %c0_i32_0 = arith.constant 0 : i32
    return %arg0, %c0_i32 : i32, i32
  }
}

</mosaic_0001>

<bundles_post_ra>
// kernel: tpu_custom_call.1
= control target key start
LH: loop header
LB: loop body
LE: loop exit
PB: predicated region body
PF: predicated region fallthrough
CT: control target
= control target key end

     0   :  { %vm77_vm0 = vcmask 1043456   ;;  %vm52_vm1 = vcmask 31744   ;;  %s2214_s0 = inlined_call_operand.vmem [shape: f32[8,8,4], index: 0, kind: input, shape index: {}]   ;;  %s2215_s1 = inlined_call_operand.vmem [shape: f32[4,96], index: 1, kind: input, shape index: {}]   ;;  %s2216_s2 = inlined_call_operand.vmem [shape: f32[32,96], index: 2, kind: input, shape index: {}]   ;;  %s2217_s3 = inlined_call_operand.vmem [shape: f32[1,96], index: 3, kind: input, shape index: {}]   ;;  %s2218_s4 = inlined_call_operand.vmem [shape: f32[1,32], index: 4, kind: input, shape index: {}]   ;;  %s2219_s5 = inlined_call_operand.vmem [shape: f32[32,16], index: 5, kind: input, shape index: {}]   ;;  %s2220_s6 = inlined_call_operand.vmem [shape: f32[1,16], index: 6, kind: input, shape index: {}]   ;;  %s2221_s7 = inlined_call_operand.vmem [shape: f32[1,16], index: 7, kind: input, shape index: {}]   ;;  %s2222_s8 = inlined_call_operand.vmem [shape: f32[16,8], index: 8, kind: input, shape index: {}]   ;;  %s2223_s9 = inlined_call_operand.vmem [shape: f32[1,8], index: 9, kind: input, shape index: {}]   ;;  %s2224_s10 = inlined_call_operand.hbm [shape: f32[8,8], index: 10, kind: output, shape index: {}]  }
   0x1   :  { %v44_v0 = vld [vmem:[%s2215_s1] sm:$0xf]  ;;  %v37_v3 = vld [vmem:[%s2214_s0 + $0x8] sm:$0xff]  ;;  %v42_v7 = vld [vmem:[%s2214_s0 + $0x30] sm:$0xff] }
   0x2   :  { %v36_v1 = vld [vmem:[%s2214_s0] sm:$0xff]  ;;  %1561 = vmatprep.subr.msk.mxu0 %vm77_vm0, %v44_v0  ;;  %1749 = vmatprep.subr.msk.mxu1 %vm77_vm0, %v44_v0  ;;  %v41_v4 = vld [vmem:[%s2214_s0 + $0x28] sm:$0xff]  ;;  %v203_v9 = vld [vmem:[%s2216_s2 + $0x10] sm:$0xff] }
   0x3   :  { %v40_v2 = vld [vmem:[%s2214_s0 + $0x20] sm:$0xff]  ;;  %1562 = vmatpush3.msk.msra.mxu0 %vm77_vm0, %v44_v0  ;;  %1750 = vmatpush3.msk.msra.mxu1 %vm77_vm0, %v44_v0  ;;  %v202_v6 = vld [vmem:[%s2216_s2 + $0x8] sm:$0xff]  ;;  %v204_v10 = vld [vmem:[%s2216_s2 + $0x18] sm:$0xff] }
   0x4   :  { %v201_v5 = vld [vmem:[%s2216_s2] sm:$0xff]  ;;  %1563 = vmatprep.mubr.msk.f32.mxu0 %vm52_vm1, %v36_v1  ;;  %1569 = vmatprep.mubr.msk.f32.mxu1 %vm52_vm1, %v40_v2 }
   0x5   :  { %v1950_v8 = vpack.c.bf16 %v202_v6, %v201_v5  ;;  %v1469_v11 = vld [vmem:[%s2218_s4] ss:$0 sm:$0xff]  ;;  %1564 = vmatmul.mubr.msk.f32.vlgmr.msra.gmra.mrb[0].mxu0 %vm52_vm1, %v37_v3  ;;  %1570 = vmatmul.mubr.msk.f32.vlgmr.msra.gmra.mrb[0].mxu1 %vm52_vm1, %v41_v4 }
   0x6   :  { %15 = vsyncpa [#allocation5], 0  ;;  %v1863_v12 = vmov 0.0|0.0   ;;  %1572 = vmatprep.mubr.msk.f32.mxu1 %vm52_vm1, %v42_v7  ;;  %v43_v13 = vld [vmem:[%s2214_s0 + $0x38] sm:$0xff]  ;;  %v1969_v14 = vpack.c.bf16 %v204_v10, %v203_v9  ;;  %s1864_s2 = smov 64   ;;  %vm1865_vm2 = vmmov 0  }
   0x7   :  { %1690 = vmatprep.subr.bf16.mxu1 %v1863_v12  ;;  %287 = vrot.lane.b32.xlu0 %v1469_v11, %s1864_s2  ;;  %v1866_v15 = vmov 0.0   ;;  %v1993_v16 = vld [vmem:[%s2217_s3] ss:$0 sm:$0xff]  ;;  %vm186_vm3 = vcmask 785408   ;;  %s1867_s3 = smov 96   ;;  %vm205_vm4 = vcmask 261120  }
   0x8   :  { %1692 = vmatpush3.bf16.msra.mxu1 %v1950_v8  ;;  %1702 = vmatprep.subr.bf16.mxu0 %v1863_v12  ;;  %v38_v63 = vld [vmem:[%s2214_s0 + $0x10] sm:$0xff]  ;;  %v39_v0 = vld [vmem:[%s2214_s0 + $0x18] sm:$0xff]  ;;  %vm1263_vm5 = vcmask 130048   ;;  %s1868_s13 = smov [#allocation4]   ;;  %vm1443_vm6 = vcmask 64512  }
   0x9   :  { %1693 = vmatprep.subr.bf16.mxu1 %v1863_v12  ;;  %1573 = vmatmul.mubr.msk.f32.gmra.mrb[2].mxu1 %vm52_vm1, %v43_v13  ;;  %s1451_s14 = sshll.u32 %s1868_s13, 4  ;;  %s1452_s14 = int_to_ptr.vmem [resolvable:$true] %s1451_s14 }
   0xa   :  { %1704 = vmatpush3.bf16.msra.mxu0 %v1950_v8  ;;  %1583 = vmatprep.mubr.msk.f32.mxu1 %vm1865_vm2, %v1866_v15  ;;  %s1839_s15 = scalar_lea.vmem %s1452_s14, 128  ;;  %p1844_p1 = scmp.lt.s32.totalorder %s1452_s14, %s1452_s14 }
   0xb   :  { %1705 = vmatprep.subr.bf16.mxu0 %v1863_v12  ;;  %1566 = vmatprep.mubr.msk.f32.mxu0 %vm52_vm1, %v38_v63  ;;  %p1840_p0 = scmp.ne.s32.totalorder %s1452_s14, %s1839_s15  ;;  %p1845_p2 = scmp.lt.s32.totalorder %s1839_s15, %s1839_s15 }
   0xc   :  { %1695 = vmatpush3.bf16.msra.mxu1 %v1969_v14  ;;  %1567 = vmatmul.mubr.msk.f32.gmra.mrb[2].mxu0 %vm52_vm1, %v39_v0 }
   0xd   :  { %1696 = vmatprep.subr.bf16.mxu1 %v1863_v12  ;;  %1605 = vmatprep.mubr.msk.f32.mxu0 %vm1865_vm2, %v1866_v15  ;;  %p1846_p3 = por %p1845_p2, %p1844_p1 }
   0xe   :  { %1707 = vmatpush3.bf16.msra.mxu0 %v1969_v14 }
   0xf   :  { %1584 = vmatmul.mubr.f32.vlgmr.msra.gmra.mrb[4].mxu1 %v1866_v15  ;;  %1714 = vmatprep.subr.bf16.mxu0 %v1863_v12  ;;  %p1847_p4 = pnand %p1846_p3, %p1840_p0 }
  0x10   :  { %1698 = vmatpush3.bf16.msra.mxu1 %v1950_v8  ;;  %1594 = vmatprep.mubr.msk.f32.mxu1 %vm1865_vm2, %v1866_v15 }
  0x11   :  { %1699 = vmatprep.subr.bf16.mxu1 %v1863_v12 }
  0x14   :  { %1701 = vmatpush3.bf16.msra.mxu1 %v1969_v14 }
  0x15   :  { %1708 = vmatprep.subr.bf16.mxu1 %v1863_v12 }
  0x79   :  { %v2006_v29 = vpop.permute.xlu0 %287 }
  0xd8   :  { %v1565_v17 = vpop.f32.mrb[0].mxu0  ;;  %v1571_v18 = vpop.f32.mrb[0].mxu1 }
  0xd9   :  { %v153_v19 = vadd.f32 %v1565_v17, %v1993_v16  ;;  %v173_v20 = vadd.f32 %v1571_v18, %v1993_v16  ;;  %v147_v21 = vpop.f32.mrb[1].mxu0  ;;  %v167_v22 = vpop.f32.mrb[1].mxu1 }
  0xda   :  { %v148_v23 = vadd.f32 %v1993_v16, %v147_v21  ;;  %v168_v24 = vadd.f32 %v1993_v16, %v167_v22 }
  0xdb   :  { %188 = vst.msk [vmem:[#allocation2 + $0x8] sm:$0xff] %vm186_vm3, %v153_v19  ;;  %192 = vst.msk [vmem:[#allocation2 + $0x28] sm:$0xff] %vm186_vm3, %v173_v20 }
  0xdc   :  { %187 = vst.msk [vmem:[#allocation2] sm:$0xff] %vm186_vm3, %v148_v23  ;;  %191 = vst.msk [vmem:[#allocation2 + $0x20] sm:$0xff] %vm186_vm3, %v168_v24  ;;  %v1574_v25 = vpop.f32.mrb[2].mxu1 }
  0xdd   :  { %v183_v26 = vadd.f32 %v1574_v25, %v1993_v16  ;;  %v177_v27 = vpop.f32.mrb[3].mxu1 }
  0xde   :  { %v178_v28 = vadd.f32 %v1993_v16, %v177_v27 }
  0xdf   :  { %194 = vst.msk [vmem:[#allocation2 + $0x38] sm:$0xff] %vm186_vm3, %v183_v26  ;;  %v1568_v7 = vpop.f32.mrb[2].mxu0 }
  0xe0   :  { %193 = vst.msk [vmem:[#allocation2 + $0x30] sm:$0xff] %vm186_vm3, %v178_v28  ;;  %v163_v9 = vadd.f32 %v1568_v7, %v1993_v16  ;;  %v157_v10 = vpop.f32.mrb[3].mxu0 }
  0xe1   :  { %v158_v11 = vadd.f32 %v1993_v16, %v157_v10 }
  0xe2   :  { %v275_v30 = vpop.f32.mrb[4].mxu1  ;;  %v392_v53 = vld [vmem:[#allocation2 + $0x8] sm:$0xff]  ;;  %190 = vst.msk [vmem:[#allocation2 + $0x18] sm:$0xff] %vm186_vm3, %v163_v9 }
  0xe3   :  { %v290_v31 = vadd.f32 %v2006_v29, %v275_v30  ;;  %v1585_v32 = vpop.f32.mrb[5].mxu1  ;;  %v279_v33 = vld [vmem:[#allocation2] sm:$0xff]  ;;  %189 = vst.msk [vmem:[#allocation2 + $0x10] sm:$0xff] %vm186_vm3, %v158_v11 }
  0xe4   :  { %v280_v34 = vadd.f32 %v279_v33, %v275_v30 }
  0xe5   :  { %292 = vrot.lane.b32.xlu0 %v290_v31, %s1864_s2 }
  0xe6   :  { %v1470_v35 = vmul.f32 -1.442695, %v280_v34 }
  0xe8   :  { %1757 = vpow2.f32 %v1470_v35 }
  0xea   :  { %v503_v19 = vld [vmem:[#allocation2 + $0x10] sm:$0xff] }
  0xf2   :  { %v1758_v36 = vpop.eup %1757 }
  0xf3   :  { %v284_v37 = vadd.f32 1.0, %v1758_v36 }
  0xf5   :  { %1759 = vrcp.f32 %v284_v37 }
  0xff   :  { %v1760_v38 = vpop.eup %1759 }
 0x100   :  { %v302_v44 = vsub.f32 1.0, %v1760_v38  ;;  %v308_v46 = vmul.f32 0.0, %v1760_v38 }
 0x157   :  { %v293_v39 = vpop.permute.xlu0 %292 }
 0x158   :  { %v295_v40 = vmul.f32 %v1760_v38, %v293_v39 }
 0x15a   :  { %297 = vrot.lane.b32.xlu1 %v295_v40, %s1864_s2  ;;  %v614_v40 = vld [vmem:[#allocation2 + $0x18] sm:$0xff] }
 0x1cc   :  { %v298_v41 = vpop.permute.xlu1 %297 }
 0x1cd   :  { %v300_v42 = vadd.f32 %v298_v41, %v279_v33 }
 0x1cf   :  { %1761 = vtanh.f32 %v300_v42 }
 0x1d9   :  { %v1762_v43 = vpop.eup %1761 }
 0x1da   :  { %304 = vrot.lane.b32.xlu1 %v1762_v43, %s1867_s3 }
 0x24c   :  { %v305_v45 = vpop.permute.xlu1 %304 }
 0x24d   :  { %v307_v47 = vmul.f32 %v305_v45, %v302_v44 }
 0x24f   :  { %v309_v48 = vadd.f32 %v308_v46, %v307_v47 }
 0x251   :  { %311 = vrot.lane.b32.xlu0 %v309_v48, %s1867_s3 }
 0x2c3   :  { %v312_v49 = vpop.permute.xlu0 %311 }
 0x2c4   :  { %314 = vst.msk [vmem:[#allocation3] sm:$0xff] %vm205_vm4, %v312_v49  ;;  %1595 = vmatmul.mubr.msk.f32.vlgmr.msra.gmra.mrb[6].mxu1 %vm205_vm4, %v312_v49 }
 0x2c5   :  { %1710 = vmatpush3.bf16.msra.mxu1 %v1950_v8  ;;  %1616 = vmatprep.mubr.msk.f32.mxu1 %vm1865_vm2, %v1866_v15 }
 0x2c6   :  { %1711 = vmatprep.subr.bf16.mxu1 %v1863_v12 }
 0x2c9   :  { %1713 = vmatpush3.bf16.msra.mxu1 %v1969_v14 }
 0x2ca   :  { %1720 = vmatprep.subr.bf16.mxu1 %v1863_v12 }
 0x397   :  { %v387_v50 = vpop.f32.mrb[6].mxu1 }
 0x398   :  { %v400_v51 = vadd.f32 %v387_v50, %v2006_v29  ;;  %v1596_v52 = vpop.f32.mrb[7].mxu1  ;;  %v393_v54 = vadd.f32 %v392_v53, %v387_v50 }
 0x39a   :  { %402 = vrot.lane.b32.xlu1 %v400_v51, %s1864_s2  ;;  %v1472_v55 = vmul.f32 -1.442695, %v393_v54 }
 0x39c   :  { %1763 = vpow2.f32 %v1472_v55 }
 0x3a6   :  { %v1764_v56 = vpop.eup %1763 }
 0x3a7   :  { %v397_v57 = vadd.f32 1.0, %v1764_v56 }
 0x3a9   :  { %1765 = vrcp.f32 %v397_v57 }
 0x3b3   :  { %v1766_v58 = vpop.eup %1765 }
 0x3b4   :  { %v412_v2 = vsub.f32 1.0, %v1766_v58  ;;  %v418_v4 = vmul.f32 %v1766_v58, %v309_v48 }
 0x40c   :  { %v403_v59 = vpop.permute.xlu1 %402 }
 0x40d   :  { %v405_v60 = vmul.f32 %v1766_v58, %v403_v59 }
 0x40f   :  { %407 = vrot.lane.b32.xlu0 %v405_v60, %s1864_s2  ;;  %v725_v60 = vld [vmem:[#allocation2 + $0x20] sm:$0xff] }
 0x481   :  { %v408_v61 = vpop.permute.xlu0 %407 }
 0x482   :  { %v410_v62 = vadd.f32 %v408_v61, %v392_v53 }
 0x484   :  { %1767 = vtanh.f32 %v410_v62 }
 0x48e   :  { %v1768_v1 = vpop.eup %1767 }
 0x48f   :  { %414 = vrot.lane.b32.xlu1 %v1768_v1, %s1867_s3 }
 0x501   :  { %v415_v3 = vpop.permute.xlu1 %414 }
 0x502   :  { %v417_v5 = vmul.f32 %v415_v3, %v412_v2 }
 0x504   :  { %v419_v6 = vadd.f32 %v418_v4, %v417_v5 }
 0x506   :  { %421 = vrot.lane.b32.xlu0 %v419_v6, %s1867_s3 }
 0x578   :  { %v422_v13 = vpop.permute.xlu0 %421 }
 0x579   :  { %425 = vst.msk [vmem:[#allocation3 + $0x8] sm:$0xff] %vm205_vm4, %v422_v13  ;;  %1606 = vmatmul.mubr.msk.f32.vlgmr.msra.gmra.mrb[4].mxu0 %vm205_vm4, %v422_v13 }
 0x57a   :  { %1716 = vmatpush3.bf16.msra.mxu0 %v1950_v8  ;;  %1627 = vmatprep.mubr.msk.f32.mxu0 %vm1865_vm2, %v1866_v15 }
 0x57b   :  { %1717 = vmatprep.subr.bf16.mxu0 %v1863_v12 }
 0x57e   :  { %1719 = vmatpush3.bf16.msra.mxu0 %v1969_v14 }
 0x57f   :  { %1726 = vmatprep.subr.bf16.mxu0 %v1863_v12 }
 0x64c   :  { %v498_v16 = vpop.f32.mrb[4].mxu0 }
 0x64d   :  { %v511_v17 = vadd.f32 %v498_v16, %v2006_v29  ;;  %v1607_v18 = vpop.f32.mrb[5].mxu0  ;;  %v504_v20 = vadd.f32 %v503_v19, %v498_v16 }
 0x64f   :  { %513 = vrot.lane.b32.xlu1 %v511_v17, %s1864_s2  ;;  %v1474_v21 = vmul.f32 -1.442695, %v504_v20  ;;  %v836_v20 = vld [vmem:[#allocation2 + $0x28] sm:$0xff] }
 0x651   :  { %1769 = vpow2.f32 %v1474_v21 }
 0x65b   :  { %v1770_v22 = vpop.eup %1769 }
 0x65c   :  { %v508_v23 = vadd.f32 1.0, %v1770_v22 }
 0x65e   :  { %1771 = vrcp.f32 %v508_v23 }
 0x668   :  { %v1772_v24 = vpop.eup %1771 }
 0x669   :  { %v523_v31 = vsub.f32 1.0, %v1772_v24  ;;  %v529_v33 = vmul.f32 %v1772_v24, %v419_v6 }
 0x6c1   :  { %v514_v25 = vpop.permute.xlu1 %513 }
 0x6c2   :  { %v516_v26 = vmul.f32 %v1772_v24, %v514_v25 }
 0x6c4   :  { %518 = vrot.lane.b32.xlu0 %v516_v26, %s1864_s2 }
 0x736   :  { %v519_v27 = vpop.permute.xlu0 %518 }
 0x737   :  { %v521_v28 = vadd.f32 %v519_v27, %v503_v19  ;;  %v1100_v27 = vld [vmem:[%s2219_s5] sm:$0xff] }
 0x739   :  { %1773 = vtanh.f32 %v521_v28  ;;  %v1101_v28 = vld [vmem:[%s2219_s5 + $0x8] sm:$0xff] }
 0x743   :  { %v1774_v30 = vpop.eup %1773 }
 0x744   :  { %525 = vrot.lane.b32.xlu1 %v1774_v30, %s1867_s3  ;;  %v1738_v30 = vpack.c.bf16 %v1101_v28, %v1100_v27  ;;  %v1494_v28 = vld [vmem:[%s2221_s7] ss:$0 sm:$0xff] }
 0x7b6   :  { %v526_v32 = vpop.permute.xlu1 %525 }
 0x7b7   :  { %v528_v34 = vmul.f32 %v526_v32, %v523_v31 }
 0x7b9   :  { %v530_v35 = vadd.f32 %v529_v33, %v528_v34 }
 0x7bb   :  { %532 = vrot.lane.b32.xlu0 %v530_v35, %s1867_s3 }
 0x82d   :  { %v533_v36 = vpop.permute.xlu0 %532 }
 0x82e   :  { %536 = vst.msk [vmem:[#allocation3 + $0x10] sm:$0xff] %vm205_vm4, %v533_v36  ;;  %1617 = vmatmul.mubr.msk.f32.vlgmr.msra.gmra.mrb[8].mxu1 %vm205_vm4, %v533_v36 }
 0x82f   :  { %1722 = vmatpush3.bf16.msra.mxu1 %v1950_v8  ;;  %1638 = vmatprep.mubr.msk.f32.mxu1 %vm1865_vm2, %v1866_v15 }
 0x830   :  { %1723 = vmatprep.subr.bf16.mxu1 %v1863_v12 }
 0x833   :  { %1725 = vmatpush3.bf16.msra.mxu1 %v1969_v14 }
 0x834   :  { %1732 = vmatprep.subr.bf16.mxu1 %v1863_v12 }
 0x901   :  { %v609_v37 = vpop.f32.mrb[8].mxu1 }
 0x902   :  { %v622_v38 = vadd.f32 %v609_v37, %v2006_v29  ;;  %v1618_v39 = vpop.f32.mrb[9].mxu1  ;;  %v615_v41 = vadd.f32 %v614_v40, %v609_v37  ;;  %v1102_v37 = vld [vmem:[%s2219_s5 + $0x10] sm:$0xff] }
 0x904   :  { %624 = vrot.lane.b32.xlu1 %v622_v38, %s1864_s2  ;;  %v1476_v42 = vmul.f32 -1.442695, %v615_v41  ;;  %v1103_v38 = vld [vmem:[%s2219_s5 + $0x18] sm:$0xff]  ;;  %v1092_v41 = vld [vmem:[#allocation3] sm:$0xff] }
 0x905   :  { %v1742_v39 = vpack.c.bf16 %v1103_v38, %v1102_v37 }
 0x906   :  { %1775 = vpow2.f32 %v1476_v42  ;;  %v1093_v42 = vld [vmem:[#allocation3 + $0x8] sm:$0xff] }
 0x910   :  { %v1776_v43 = vpop.eup %1775 }
 0x911   :  { %v619_v44 = vadd.f32 1.0, %v1776_v43  ;;  %v1094_v43 = vld [vmem:[#allocation3 + $0x10] sm:$0xff] }
 0x913   :  { %1777 = vrcp.f32 %v619_v44 }
 0x91d   :  { %v1778_v45 = vpop.eup %1777 }
 0x91e   :  { %v634_v51 = vsub.f32 1.0, %v1778_v45  ;;  %v640_v53 = vmul.f32 %v1778_v45, %v530_v35 }
 0x976   :  { %v625_v46 = vpop.permute.xlu1 %624 }
 0x977   :  { %v627_v47 = vmul.f32 %v1778_v45, %v625_v46 }
 0x979   :  { %629 = vrot.lane.b32.xlu0 %v627_v47, %s1864_s2 }
 0x9eb   :  { %v630_v48 = vpop.permute.xlu0 %629 }
 0x9ec   :  { %v632_v49 = vadd.f32 %v630_v48, %v614_v40 }
 0x9ee   :  { %1779 = vtanh.f32 %v632_v49 }
 0x9f8   :  { %v1780_v50 = vpop.eup %1779 }
 0x9f9   :  { %636 = vrot.lane.b32.xlu1 %v1780_v50, %s1867_s3 }
 0xa6b   :  { %v637_v52 = vpop.permute.xlu1 %636 }
 0xa6c   :  { %v639_v54 = vmul.f32 %v637_v52, %v634_v51 }
 0xa6e   :  { %v641_v55 = vadd.f32 %v640_v53, %v639_v54 }
 0xa70   :  { %643 = vrot.lane.b32.xlu0 %v641_v55, %s1867_s3 }
 0xae2   :  { %v644_v56 = vpop.permute.xlu0 %643 }
 0xae3   :  { %647 = vst.msk [vmem:[#allocation3 + $0x18] sm:$0xff] %vm205_vm4, %v644_v56  ;;  %1628 = vmatmul.mubr.msk.f32.vlgmr.msra.gmra.mrb[6].mxu0 %vm205_vm4, %v644_v56  ;;  %v947_v56 = vld [vmem:[#allocation2 + $0x30] sm:$0xff] }
 0xae4   :  { %1728 = vmatpush3.bf16.msra.mxu0 %v1950_v8  ;;  %1649 = vmatprep.mubr.msk.f32.mxu0 %vm1865_vm2, %v1866_v15 }
 0xae5   :  { %1729 = vmatprep.subr.bf16.mxu0 %v1863_v12 }
 0xae8   :  { %1731 = vmatpush3.bf16.msra.mxu0 %v1969_v14 }
 0xae9   :  { %1739 = vmatprep.subr.bf16.mxu0 %v1738_v30 }
 0xaea   :  { %v1095_v44 = vld [vmem:[#allocation3 + $0x18] sm:$0xff] }
 0xbb6   :  { %v720_v57 = vpop.f32.mrb[6].mxu0 }
 0xbb7   :  { %v733_v58 = vadd.f32 %v720_v57, %v2006_v29  ;;  %v1629_v59 = vpop.f32.mrb[7].mxu0  ;;  %v726_v61 = vadd.f32 %v725_v60, %v720_v57 }
 0xbb9   :  { %735 = vrot.lane.b32.xlu1 %v733_v58, %s1864_s2  ;;  %v1478_v62 = vmul.f32 -1.442695, %v726_v61 }
 0xbbb   :  { %1781 = vpow2.f32 %v1478_v62 }
 0xbc5   :  { %v1782_v63 = vpop.eup %1781 }
 0xbc6   :  { %v730_v0 = vadd.f32 1.0, %v1782_v63 }
 0xbc8   :  { %1783 = vrcp.f32 %v730_v0 }
 0xbd2   :  { %v1784_v1 = vpop.eup %1783 }
 0xbd3   :  { %v745_v7 = vsub.f32 1.0, %v1784_v1  ;;  %v751_v10 = vmul.f32 %v1784_v1, %v641_v55 }
 0xc2b   :  { %v736_v2 = vpop.permute.xlu1 %735 }
 0xc2c   :  { %v738_v3 = vmul.f32 %v1784_v1, %v736_v2 }
 0xc2e   :  { %740 = vrot.lane.b32.xlu0 %v738_v3, %s1864_s2 }
 0xca0   :  { %v741_v4 = vpop.permute.xlu0 %740 }
 0xca1   :  { %v743_v5 = vadd.f32 %v741_v4, %v725_v60 }
 0xca3   :  { %1785 = vtanh.f32 %v743_v5 }
 0xcad   :  { %v1786_v6 = vpop.eup %1785 }
 0xcae   :  { %747 = vrot.lane.b32.xlu1 %v1786_v6, %s1867_s3 }
 0xd20   :  { %v748_v9 = vpop.permute.xlu1 %747 }
 0xd21   :  { %v750_v11 = vmul.f32 %v748_v9, %v745_v7 }
 0xd23   :  { %v752_v13 = vadd.f32 %v751_v10, %v750_v11 }
 0xd25   :  { %754 = vrot.lane.b32.xlu0 %v752_v13, %s1867_s3 }
 0xd97   :  { %v755_v16 = vpop.permute.xlu0 %754 }
 0xd98   :  { %758 = vst.msk [vmem:[#allocation3 + $0x20] sm:$0xff] %vm205_vm4, %v755_v16  ;;  %1639 = vmatmul.mubr.msk.f32.vlgmr.msra.gmra.mrb[10].mxu1 %vm205_vm4, %v755_v16 }
 0xd99   :  { %1734 = vmatpush3.bf16.msra.mxu1 %v1950_v8  ;;  %1660 = vmatprep.mubr.msk.f32.mxu1 %vm1865_vm2, %v1866_v15 }
 0xd9a   :  { %1735 = vmatprep.subr.bf16.mxu1 %v1863_v12 }
 0xd9d   :  { %1737 = vmatpush3.bf16.msra.mxu1 %v1969_v14 }
 0xd9e   :  { %1746 = vmatprep.subr.bf16.mxu1 %v1863_v12 }
 0xd9f   :  { %v1096_v45 = vld [vmem:[#allocation3 + $0x20] sm:$0xff] }
 0xe6b   :  { %v831_v17 = vpop.f32.mrb[10].mxu1 }
 0xe6c   :  { %v844_v18 = vadd.f32 %v831_v17, %v2006_v29  ;;  %v1640_v19 = vpop.f32.mrb[11].mxu1  ;;  %v837_v21 = vadd.f32 %v836_v20, %v831_v17  ;;  %v1058_v17 = vld [vmem:[#allocation2 + $0x38] sm:$0xff] }
 0xe6e   :  { %846 = vrot.lane.b32.xlu1 %v844_v18, %s1864_s2  ;;  %v1480_v22 = vmul.f32 -1.442695, %v837_v21 }
 0xe70   :  { %1787 = vpow2.f32 %v1480_v22 }
 0xe7a   :  { %v1788_v8 = vpop.eup %1787 }
 0xe7b   :  { %v841_v23 = vadd.f32 1.0, %v1788_v8 }
 0xe7d   :  { %1789 = vrcp.f32 %v841_v23 }
 0xe87   :  { %v1790_v24 = vpop.eup %1789 }
 0xe88   :  { %v856_v32 = vsub.f32 1.0, %v1790_v24  ;;  %v862_v34 = vmul.f32 %v1790_v24, %v752_v13 }
 0xee0   :  { %v847_v25 = vpop.permute.xlu1 %846 }
 0xee1   :  { %v849_v26 = vmul.f32 %v1790_v24, %v847_v25 }
 0xee3   :  { %851 = vrot.lane.b32.xlu0 %v849_v26, %s1864_s2 }
 0xf55   :  { %v852_v14 = vpop.permute.xlu0 %851 }
 0xf56   :  { %v854_v12 = vadd.f32 %v852_v14, %v836_v20 }
 0xf58   :  { %1791 = vtanh.f32 %v854_v12 }
 0xf62   :  { %v1792_v31 = vpop.eup %1791 }
 0xf63   :  { %858 = vrot.lane.b32.xlu1 %v1792_v31, %s1867_s3 }
 0xfd5   :  { %v859_v33 = vpop.permute.xlu1 %858 }
 0xfd6   :  { %v861_v35 = vmul.f32 %v859_v33, %v856_v32 }
 0xfd8   :  { %v863_v36 = vadd.f32 %v862_v34, %v861_v35 }
 0xfda   :  { %865 = vrot.lane.b32.xlu0 %v863_v36, %s1867_s3 }
0x104c   :  { %v866_v40 = vpop.permute.xlu0 %865 }
0x104d   :  { %869 = vst.msk [vmem:[#allocation3 + $0x28] sm:$0xff] %vm205_vm4, %v866_v40  ;;  %1650 = vmatmul.mubr.msk.f32.vlgmr.msra.gmra.mrb[8].mxu0 %vm205_vm4, %v866_v40 }
0x104e   :  { %1741 = vmatpush3.bf16.msra.mxu0 %v1738_v30  ;;  %1671 = vmatprep.mubr.msk.f32.mxu0 %vm205_vm4, %v1092_v41 }
0x104f   :  { %1743 = vmatprep.subr.bf16.mxu0 %v1742_v39 }
0x1052   :  { %1745 = vmatpush3.bf16.msra.mxu0 %v1742_v39 }
0x1054   :  { %v1097_v46 = vld [vmem:[#allocation3 + $0x28] sm:$0xff] }
0x1055   :  { %1672 = vmatmul.mubr.msk.f32.vlgmr.msra.gmra.mrb[10].mxu0 %vm205_vm4, %v1093_v42 }
0x1056   :  { %1674 = vmatprep.mubr.msk.f32.mxu0 %vm205_vm4, %v1094_v43 }
0x1059   :  { %1675 = vmatmul.mubr.msk.f32.gmra.mrb[12].mxu0 %vm205_vm4, %v1095_v44 }
0x105a   :  { %1677 = vmatprep.mubr.msk.f32.mxu0 %vm205_vm4, %v1096_v45 }
0x105d   :  { %1678 = vmatmul.mubr.msk.f32.gmra.mrb[14].mxu0 %vm205_vm4, %v1097_v46 }
0x1120   :  { %v942_v47 = vpop.f32.mrb[8].mxu0 }
0x1121   :  { %v955_v48 = vadd.f32 %v942_v47, %v2006_v29  ;;  %v1651_v49 = vpop.f32.mrb[9].mxu0  ;;  %v948_v57 = vadd.f32 %v947_v56, %v942_v47 }
0x1123   :  { %957 = vrot.lane.b32.xlu1 %v955_v48, %s1864_s2  ;;  %v1482_v58 = vmul.f32 -1.442695, %v948_v57 }
0x1125   :  { %1793 = vpow2.f32 %v1482_v58 }
0x1128   :  { %v2114_v50 = vpop.f32.mrb[10].mxu0 }
0x1129   :  { %v1201_v51 = vpop.f32.mrb[11].mxu0 }
0x112c   :  { %v1676_v52 = vpop.f32.mrb[12].mxu0 }
0x112d   :  { %v2116_v53 = vpop.f32.mrb[13].mxu0 }
0x112f   :  { %v1794_v59 = vpop.eup %1793 }
0x1130   :  { %v1679_v54 = vpop.f32.mrb[14].mxu0  ;;  %v952_v60 = vadd.f32 1.0, %v1794_v59 }
0x1131   :  { %v2118_v55 = vpop.f32.mrb[15].mxu0 }
0x1132   :  { %1795 = vrcp.f32 %v952_v60 }
0x113c   :  { %v1796_v61 = vpop.eup %1795 }
0x113d   :  { %v967_v3 = vsub.f32 1.0, %v1796_v61  ;;  %v973_v5 = vmul.f32 %v1796_v61, %v863_v36 }
0x1195   :  { %v958_v62 = vpop.permute.xlu1 %957 }
0x1196   :  { %v960_v63 = vmul.f32 %v1796_v61, %v958_v62 }
0x1198   :  { %962 = vrot.lane.b32.xlu0 %v960_v63, %s1864_s2 }
0x120a   :  { %v963_v0 = vpop.permute.xlu0 %962 }
0x120b   :  { %v965_v1 = vadd.f32 %v963_v0, %v947_v56 }
0x120d   :  { %1797 = vtanh.f32 %v965_v1 }
0x1217   :  { %v1798_v2 = vpop.eup %1797 }
0x1218   :  { %969 = vrot.lane.b32.xlu1 %v1798_v2, %s1867_s3 }
0x128a   :  { %v970_v4 = vpop.permute.xlu1 %969 }
0x128b   :  { %v972_v6 = vmul.f32 %v970_v4, %v967_v3  ;;  %v1361_v3 = vld [vmem:[%s2222_s8] sm:$0xff]  ;;  %v1362_v4 = vld [vmem:[%s2222_s8 + $0x8] sm:$0xff] }
0x128d   :  { %v974_v7 = vadd.f32 %v973_v5, %v972_v6  ;;  %v1747_v5 = vpack.c.bf16 %v1362_v4, %v1361_v3 }
0x128f   :  { %976 = vrot.lane.b32.xlu0 %v974_v7, %s1867_s3 }
0x1301   :  { %v977_v9 = vpop.permute.xlu0 %976 }
0x1302   :  { %980 = vst.msk [vmem:[#allocation3 + $0x30] sm:$0xff] %vm205_vm4, %v977_v9  ;;  %1661 = vmatmul.mubr.msk.f32.vlgmr.msra.gmra.mrb[12].mxu1 %vm205_vm4, %v977_v9 }
0x1303   :  { %1687 = vmatprep.mubr.msk.f32.mxu1 %vm1865_vm2, %v1866_v15  ;;  %1748 = vmatpush3.bf16.msra.mxu1 %v1747_v5 }
0x1309   :  { %v1098_v10 = vld [vmem:[#allocation3 + $0x30] sm:$0xff] }
0x130a   :  { %1680 = vmatprep.mubr.msk.f32.mxu0 %vm205_vm4, %v1098_v10 }
0x13d5   :  { %v1053_v11 = vpop.f32.mrb[12].mxu1 }
0x13d6   :  { %v1066_v13 = vadd.f32 %v1053_v11, %v2006_v29  ;;  %v1662_v16 = vpop.f32.mrb[13].mxu1  ;;  %v1059_v18 = vadd.f32 %v1058_v17, %v1053_v11  ;;  %v1485_v29 = vld [vmem:[%s2220_s6] ss:$0 sm:$0xff] }
0x13d7   :  { %v1202_v26 = vadd.f32 %v1485_v29, %v1201_v51  ;;  %v1217_v14 = vadd.f32 %v1676_v52, %v1485_v29  ;;  %v1227_v12 = vadd.f32 %v1679_v54, %v1485_v29  ;;  %v1207_v43 = vadd.f32 %v2114_v50, %v1485_v29 }
0x13d8   :  { %1068 = vrot.lane.b32.xlu1 %v1066_v13, %s1864_s2  ;;  %v1484_v19 = vmul.f32 -1.442695, %v1059_v18  ;;  %v1212_v44 = vadd.f32 %v1485_v29, %v2116_v53  ;;  %v1222_v45 = vadd.f32 %v1485_v29, %v2118_v55 }
0x13da   :  { %1799 = vpow2.f32 %v1484_v19 }
0x13e4   :  { %v1800_v20 = vpop.eup %1799 }
0x13e5   :  { %v1063_v21 = vadd.f32 1.0, %v1800_v20 }
0x13e7   :  { %1801 = vrcp.f32 %v1063_v21 }
0x13f1   :  { %v1802_v22 = vpop.eup %1801 }
0x13f2   :  { %v1078_v38 = vsub.f32 1.0, %v1802_v22  ;;  %v1084_v40 = vmul.f32 %v1802_v22, %v974_v7 }
0x144a   :  { %v1069_v8 = vpop.permute.xlu1 %1068 }
0x144b   :  { %v1071_v23 = vmul.f32 %v1802_v22, %v1069_v8 }
0x144d   :  { %1073 = vrot.lane.b32.xlu0 %v1071_v23, %s1864_s2 }
0x14bf   :  { %v1074_v15 = vpop.permute.xlu0 %1073 }
0x14c0   :  { %v1076_v24 = vadd.f32 %v1074_v15, %v1058_v17 }
0x14c2   :  { %1803 = vtanh.f32 %v1076_v24 }
0x14c3   :  { %1805 = vtanh.f32 %v1202_v26 }
0x14c4   :  { %1807 = vtanh.f32 %v1217_v14 }
0x14c5   :  { %1809 = vtanh.f32 %v1227_v12 }
0x14c6   :  { %1811 = vtanh.f32 %v1207_v43 }
0x14c7   :  { %1813 = vtanh.f32 %v1212_v44 }
0x14c8   :  { %1815 = vtanh.f32 %v1222_v45 }
0x14cc   :  { %v1804_v25 = vpop.eup %1803 }
0x14cd   :  { %1080 = vrot.lane.b32.xlu1 %v1804_v25, %s1867_s3  ;;  %v2135_v27 = vpop.eup %1805 }
0x14ce   :  { %v1255_v30 = vmul.f32 %v2135_v27, %v1494_v28  ;;  %v2141_v31 = vpop.eup %1807 }
0x14cf   :  { %v1258_v33 = vmul.f32 %v2141_v31, %v1494_v28  ;;  %v2145_v34 = vpop.eup %1809 }
0x14d0   :  { %v1264_v32 = vsel %vm1263_vm5, %v1255_v30, 0.0  ;;  %v1260_v36 = vmul.f32 %v2145_v34, %v1494_v28  ;;  %v2154_v46 = vpop.eup %1811 }
0x14d1   :  { %v1273_v35 = vsel %vm1263_vm5, %v1258_v33, 0.0  ;;  %v1256_v47 = vmul.f32 %v2154_v46, %v1494_v28  ;;  %v2157_v48 = vpop.eup %1813 }
0x14d2   :  { %v1279_v37 = vsel %vm1263_vm5, %v1260_v36, 0.0  ;;  %v1257_v51 = vmul.f32 %v2157_v48, %v1494_v28  ;;  %v2161_v52 = vpop.eup %1815 }
0x14d3   :  { %v1267_v49 = vsel %vm1263_vm5, %v1256_v47, 0.0  ;;  %v1259_v53 = vmul.f32 %v2161_v52, %v1494_v28 }
0x14d4   :  { %v1270_v50 = vsel %vm1263_vm5, %v1257_v51, 0.0 }
0x14d5   :  { %v1276_v54 = vsel %vm1263_vm5, %v1259_v53, 0.0 }
0x14f1   :  { %1265 = vadd.xlane.f32.xlu1 %v1264_v32 }
0x14f5   :  { %1274 = vadd.xlane.f32.xlu1 %v1273_v35 }
0x14f9   :  { %1280 = vadd.xlane.f32.xlu1 %v1279_v37 }
0x153f   :  { %v1081_v39 = vpop.permute.xlu1 %1080 }
0x1540   :  { %v1083_v41 = vmul.f32 %v1081_v39, %v1078_v38 }
0x1542   :  { %v1085_v42 = vadd.f32 %v1084_v40, %v1083_v41 }
0x1544   :  { %1087 = vrot.lane.b32.xlu0 %v1085_v42, %s1867_s3 }
0x1563   :  { %1268 = vadd.xlane.f32.xlu0 %v1267_v49 }
0x1567   :  { %1271 = vadd.xlane.f32.xlu0 %v1270_v50 }
0x156b   :  { %1277 = vadd.xlane.f32.xlu0 %v1276_v54 }
0x157e   :  { %v1266_v6 = vpop.xlane.xlu1 %1265 }
0x1582   :  { %v1275_v9 = vpop.xlane.xlu1 %1274 }
0x1586   :  { %v1281_v11 = vpop.xlane.xlu1 %1280 }
0x15b6   :  { %v1088_v55 = vpop.permute.xlu0 %1087 }
0x15b7   :  { %1091 = vst.msk [vmem:[#allocation3 + $0x38] sm:$0xff] %vm205_vm4, %v1088_v55 }
0x15be   :  { %v1099_v56 = vld [vmem:[#allocation3 + $0x38] sm:$0xff] }
0x15bf   :  { %1681 = vmatmul.mubr.msk.f32.gmra.mrb[16].mxu0 %vm205_vm4, %v1099_v56 }
0x15f0   :  { %v1269_v7 = vpop.xlane.xlu0 %1268 }
0x15f1   :  { %v1289_v20 = vmax.f32 %v1269_v7, %v1281_v11 }
0x15f4   :  { %v1272_v10 = vpop.xlane.xlu0 %1271 }
0x15f8   :  { %v1278_v13 = vpop.xlane.xlu0 %1277 }
0x15f9   :  { %v1288_v16 = vmax.f32 %v1266_v6, %v1278_v13 }
0x15fb   :  { %v1292_v22 = vmax.f32 %v1288_v16, %v1289_v20 }
0x1692   :  { %v1682_v57 = vpop.f32.mrb[16].mxu0 }
0x1693   :  { %v1237_v58 = vadd.f32 %v1682_v57, %v1485_v29  ;;  %v1231_v59 = vpop.f32.mrb[17].mxu0 }
0x1694   :  { %v1232_v60 = vadd.f32 %v1485_v29, %v1231_v59 }
0x1695   :  { %1817 = vtanh.f32 %v1237_v58 }
0x1696   :  { %1819 = vtanh.f32 %v1232_v60 }
0x169f   :  { %v2168_v61 = vpop.eup %1817 }
0x16a0   :  { %v2170_v62 = vpop.eup %1819  ;;  %v1262_v63 = vmul.f32 %v2168_v61, %v1494_v28 }
0x16a1   :  { %v1261_v0 = vmul.f32 %v2170_v62, %v1494_v28 }
0x16a2   :  { %v1285_v1 = vsel %vm1263_vm5, %v1262_v63, 0.0 }
0x16a3   :  { %1286 = vadd.xlane.f32.xlu1 %v1285_v1  ;;  %v1282_v2 = vsel %vm1263_vm5, %v1261_v0, 0.0 }
0x16a4   :  { %1283 = vadd.xlane.f32.xlu0 %v1282_v2 }
0x1730   :  { %v1287_v17 = vpop.xlane.xlu1 %1286 }
0x1731   :  { %v1291_v18 = vmax.f32 %v1275_v9, %v1287_v17  ;;  %v1284_v19 = vpop.xlane.xlu0 %1283 }
0x1732   :  { %v1290_v21 = vmax.f32 %v1272_v10, %v1284_v19 }
0x1734   :  { %v1293_v8 = vmax.f32 %v1290_v21, %v1291_v18 }
0x1736   :  { %v1294_v23 = vmax.f32 %v1292_v22, %v1293_v8 }
0x1738   :  { %v1295_v15 = vsub.f32 %v1266_v6, %v1294_v23  ;;  %v1296_v24 = vsub.f32 %v1269_v7, %v1294_v23  ;;  %v1297_v25 = vsub.f32 %v1272_v10, %v1294_v23  ;;  %v1298_v29 = vsub.f32 %v1275_v9, %v1294_v23 }
0x1739   :  { %v1299_v12 = vsub.f32 %v1278_v13, %v1294_v23  ;;  %v1300_v30 = vsub.f32 %v1281_v11, %v1294_v23  ;;  %v1301_v33 = vsub.f32 %v1284_v19, %v1294_v23  ;;  %v1302_v36 = vsub.f32 %v1287_v17, %v1294_v23 }
0x173a   :  { %v1303_v26 = vmul.f32 1.442695, %v1295_v15  ;;  %v1305_v14 = vmul.f32 1.442695, %v1296_v24  ;;  %v1307_v28 = vmul.f32 1.442695, %v1297_v25 }
0x173b   :  { %v1309_v32 = vmul.f32 1.442695, %v1298_v29  ;;  %v1311_v35 = vmul.f32 1.442695, %v1299_v12  ;;  %v1313_v37 = vmul.f32 1.442695, %v1300_v30 }
0x173c   :  { %1821 = vpow2.f32 %v1303_v26  ;;  %v1315_v38 = vmul.f32 1.442695, %v1301_v33  ;;  %v1317_v39 = vmul.f32 1.442695, %v1302_v36 }
0x173d   :  { %1823 = vpow2.f32 %v1305_v14 }
0x173e   :  { %1825 = vpow2.f32 %v1307_v28 }
0x173f   :  { %1827 = vpow2.f32 %v1309_v32 }
0x1740   :  { %1829 = vpow2.f32 %v1311_v35 }
0x1741   :  { %1831 = vpow2.f32 %v1313_v37 }
0x1742   :  { %1833 = vpow2.f32 %v1315_v38 }
0x1743   :  { %1835 = vpow2.f32 %v1317_v39 }
0x1746   :  { %v1822_v40 = vpop.eup %1821 }
0x1747   :  { %v1824_v41 = vpop.eup %1823 }
0x1748   :  { %v1319_v42 = vadd.f32 %v1824_v41, %v1822_v40  ;;  %v1826_v43 = vpop.eup %1825 }
0x1749   :  { %v1828_v45 = vpop.eup %1827 }
0x174a   :  { %v1320_v44 = vadd.f32 %v1826_v43, %v1319_v42  ;;  %v1830_v49 = vpop.eup %1829 }
0x174b   :  { %v1832_v50 = vpop.eup %1831 }
0x174c   :  { %v1321_v47 = vadd.f32 %v1828_v45, %v1320_v44  ;;  %v1834_v54 = vpop.eup %1833 }
0x174d   :  { %v1836_v56 = vpop.eup %1835 }
0x174e   :  { %v1322_v51 = vadd.f32 %v1830_v49, %v1321_v47 }
0x1750   :  { %v1323_v53 = vadd.f32 %v1832_v50, %v1322_v51 }
0x1752   :  { %v1324_v55 = vadd.f32 %v1834_v54, %v1323_v53 }
0x1754   :  { %v1325_v57 = vadd.f32 %v1836_v56, %v1324_v55 }
0x1756   :  { %1837 = vrcp.f32 %v1325_v57 }
0x1760   :  { %v1838_v58 = vpop.eup %1837 }
0x1761   :  { %v1327_v59 = vmul.f32 %v1838_v58, %v1325_v57 }
0x1763   :  { %v1328_v60 = vsub.f32 2.0, %v1327_v59 }
0x1765   :  { %v1329_v63 = vmul.f32 %v1838_v58, %v1328_v60 }
0x1767   :  { %v1330_v0 = vmul.f32 %v1822_v40, %v1329_v63  ;;  %v1331_v1 = vmul.f32 %v1824_v41, %v1329_v63  ;;  %v1332_v2 = vmul.f32 %v1826_v43, %v1329_v63  ;;  %v1333_v3 = vmul.f32 %v1828_v45, %v1329_v63 }
0x1768   :  { %v1334_v4 = vmul.f32 %v1830_v49, %v1329_v63  ;;  %v1335_v9 = vmul.f32 %v1832_v50, %v1329_v63  ;;  %v1336_v17 = vmul.f32 %v1834_v54, %v1329_v63  ;;  %v1337_v21 = vmul.f32 %v1836_v56, %v1329_v63 }
0x1769   :  { %v1338_v5 = vmul.f32 %v2135_v27, %v1330_v0  ;;  %v1339_v6 = vmul.f32 %v2154_v46, %v1331_v1  ;;  %v1340_v7 = vmul.f32 %v2157_v48, %v1332_v2  ;;  %v1341_v10 = vmul.f32 %v2141_v31, %v1333_v3 }
0x176a   :  { %v1342_v18 = vmul.f32 %v2161_v52, %v1334_v4  ;;  %v1343_v27 = vmul.f32 %v2145_v34, %v1335_v9  ;;  %v1344_v22 = vmul.f32 %v2170_v62, %v1336_v17  ;;  %v1345_v23 = vmul.f32 %v2168_v61, %v1337_v21  ;;  %v1495_v34 = vld [vmem:[%s2223_s9] ss:$0 sm:$0xff] }
0x176b   :  { %v1346_v11 = vsel %vm1263_vm5, %v1338_v5, 0.0  ;;  %v1347_v13 = vsel %vm1263_vm5, %v1339_v6, 0.0  ;;  %v1349_v19 = vsel %vm1263_vm5, %v1340_v7, 0.0  ;;  %v1351_v46 = vsel %vm1263_vm5, %v1341_v10, 0.0 }
0x176c   :  { %v1348_v16 = vadd.f32 %v1347_v13, %v1346_v11  ;;  %v1353_v31 = vsel %vm1263_vm5, %v1342_v18, 0.0  ;;  %v1355_v15 = vsel %vm1263_vm5, %v1343_v27, 0.0  ;;  %v1357_v52 = vsel %vm1263_vm5, %v1344_v22, 0.0 }
0x176d   :  { %v1359_v29 = vsel %vm1263_vm5, %v1345_v23, 0.0 }
0x176e   :  { %v1350_v20 = vadd.f32 %v1349_v19, %v1348_v16 }
0x1770   :  { %v1352_v48 = vadd.f32 %v1351_v46, %v1350_v20 }
0x1772   :  { %v1354_v8 = vadd.f32 %v1353_v31, %v1352_v48 }
0x1774   :  { %v1356_v24 = vadd.f32 %v1355_v15, %v1354_v8 }
0x1776   :  { %v1358_v25 = vadd.f32 %v1357_v52, %v1356_v24 }
0x1778   :  { %v1360_v26 = vadd.f32 %v1359_v29, %v1358_v25 }
0x177a   :  { %1688 = vmatmul.mubr.msk.f32.vlgmr.msra.gmra.mrb[14].mxu1 %vm1263_vm5, %v1360_v26 }
0x184d   :  { %v1439_v62 = vpop.f32.mrb[14].mxu1 }
0x184e   :  { %v1440_v61 = vadd.f32 %v1495_v34, %v1439_v62  ;;  %v1689_v14 = vpop.f32.mrb[15].mxu1 }
0x1850   :  { %1444 = vst.msk [vmem:[#allocation4] sm:$0xff] %vm1443_vm6, %v1440_v61 }
0x1851   :  { %1850 = shalt.err (!%p1847_p4)
}
0x1852   :  { %s1851_s16 = scalar_lea.hbm %s2224_s10, 128 }
0x1853   :  { %p1852_p5 = scmp.ne.s32.totalorder %s2224_s10, %s1851_s16  ;;  %p1855_p6 = scmp.lt.u32.totalorder %s1851_s16, %s2224_s10 }
0x1855   :  { %p1857_p7 = pnand %p1855_p6, %p1852_p5 }
0x1857   :  { %1860 = shalt.err (!%p1857_p7)
}
0x1858   :  { %1454 = dma.vmem_to_hbm [thread:$0]  %s1452_s14, 128, %s2224_s10, [#allocation5]  }
0x1859   :  { %1861 = dma.done.wait [#allocation5], 128  }
0x185a   :  { %1862 = vsyncadd [#allocation5], 4294967168 }
0x185b   :  { %1458 = vsyncpa [#allocation5], 1 }

</bundles_post_ra>
